<compile_context>
chip_gen: v6e
topology: v6e:2x2x1
jax: 0.10.0
libtpu: 0.0.40
codegen_flags: <defaults>
</compile_context>

<pallas_src>
import functools

import jax
import jax.numpy as jnp
import numpy as np
from jax.experimental import pallas as pl
from jax.experimental.pallas import tpu as pltpu

# ----- synthetic MambaConfig -------------------------------------------------
VOCAB = 64       # config.vocab_size
D_MODEL = 32     # config.d_model
D_INNER = 64     # config.d_inner
D_STATE = 16     # config.d_state (n)
DT_RANK = 8      # config.dt_rank
D_CONV = 4       # config.d_conv
N_LAYER = 2      # config.n_layer
BATCH = 2
SEQLEN = 8
EPS = 1e-5       # RMSNorm eps
# bias=False (in_proj / out_proj), conv_bias=True, dt_proj bias=True


def _silu(x):
    # x * sigmoid(x); sigmoid via tanh keeps it on the EUP (no explicit divide).
    return x * (0.5 * jnp.tanh(0.5 * x) + 0.5)


def _softplus(x):
    # numerically stable softplus (matches F.softplus to fp32 precision)
    return jnp.maximum(x, 0.0) + jnp.log1p(jnp.exp(-jnp.abs(x)))


# =============================================================================
# Fully fused model kernel.  One grid step == one batch element (grid=(b,),
# dimension_semantics=("parallel",)).  All layer weights are stacked along a
# leading layer axis and indexed with a static Python loop.
# =============================================================================
def _mamba_model_kernel(x_ref, norm_w_ref, in_wx_ref, in_wr_ref, conv_w_ref,
                        conv_b_ref, xp_dt_ref, xp_b_ref, xp_c_ref, dt_w_ref,
                        dt_b_ref, neg_a_ref, d_skip_ref, out_w_ref,
                        norm_f_ref, o_ref, *, n_layer, d_conv):
    x = x_ref[0].astype(jnp.float32)                         # (l, d_model)
    l = x.shape[0]
    # row index within the sequence (for masking causal-conv taps at t<shift)
    pos = jax.lax.broadcasted_iota(jnp.int32, (l, 1), 0)

    for j in range(n_layer):                                  # static unroll
        # ---- RMSNorm (pre-norm of the residual block) -----------------------
        ms = jnp.mean(x * x, axis=-1, keepdims=True)
        xn = x * jax.lax.rsqrt(ms + EPS) * norm_w_ref[j]

        # ---- in_proj: two lane-aligned dots (no slice inside a 128-lane tile)
        # TODO(synk): at real d_model/d_inner cast operands to bf16
        # (preferred_element_type stays f32); kept f32 here for a tight check.
        xi = jnp.dot(xn, in_wx_ref[j], preferred_element_type=jnp.float32)
        res = jnp.dot(xn, in_wr_ref[j], preferred_element_type=jnp.float32)

        # ---- depthwise causal conv1d: pltpu.roll (XLU) + boundary mask ------
        cw = conv_w_ref[j]                                    # (d_conv, d_inner)
        conv = xi * cw[d_conv - 1:d_conv, :]                  # zero-shift tap
        for k in range(d_conv - 1):
            shift = d_conv - 1 - k
            tap = pltpu.roll(xi, shift, 0)                    # rows t <- t-shift
            tap = jnp.where(pos >= shift, tap, 0.0)           # causal boundary
            conv = conv + tap * cw[k:k + 1, :]
        conv = conv + conv_b_ref[j]
        xc = _silu(conv)                                      # (l, d_inner)

        # ---- x_proj: three lane-aligned dots (delta / B / C) ----------------
        dt_lo = jnp.dot(xc, xp_dt_ref[j], preferred_element_type=jnp.float32)
        Bm = jnp.dot(xc, xp_b_ref[j], preferred_element_type=jnp.float32)    # (l, n)
        Cm = jnp.dot(xc, xp_c_ref[j], preferred_element_type=jnp.float32)    # (l, n)
        delta = _softplus(
            jnp.dot(dt_lo, dt_w_ref[j], preferred_element_type=jnp.float32)
            + dt_b_ref[j])                                    # (l, d_inner)

        # ---- discretization, d_inner on the lane axis ------------------------
        # TODO(synk): at real sizes do NOT materialize (l, n, d_inner); L-tile
        # the scan with a carried (n, d_inner) state + lax.fori_loop.
        neg_a = neg_a_ref[j]                                  # (n, d_inner)
        deltaA = jnp.exp(delta[:, None, :] * neg_a[None, :, :])      # (l,n,d_in)
        deltaB_u = (delta * xc)[:, None, :] * Bm[:, :, None]         # (l,n,d_in)

        # ---- selective scan: VPU state update + per-step VPU mul / XLU reduce
        # (no one-row MXU matvecs, no masked single-sublane scratch stores)
        Cm3 = Cm[:, :, None]                                  # (l, n, 1)
        state = jnp.zeros_like(deltaA[0])                     # (n, d_inner)
        y_rows = []
        for i in range(l):
            state = deltaA[i] * state + deltaB_u[i]
            y_rows.append(jnp.sum(state * Cm3[i], axis=0, keepdims=True))
        y = jnp.concatenate(y_rows, axis=0)                   # (l, d_inner)

        y = y + xc * d_skip_ref[j]
        y = y * _silu(res)                                    # gate

        # ---- out_proj + residual add -----------------------------------------
        x = x + jnp.dot(y, out_w_ref[j], preferred_element_type=jnp.float32)

    # ---- final RMSNorm (norm_f); single HBM store at the end -----------------
    ms = jnp.mean(x * x, axis=-1, keepdims=True)
    o_ref[0] = (x * jax.lax.rsqrt(ms + EPS) * norm_f_ref[...]).astype(o_ref.dtype)


# =============================================================================
# Wrapper
# =============================================================================
def _const_map(ndim):
    return lambda i: (0,) * ndim


@jax.jit
def mamba_model_forward(input_ids, embedding, stacked, norm_f_w):
    b, l = input_ids.shape
    d_model = embedding.shape[1]
    # TODO(synk): nn.Embedding row gather stays in the XLA wrapper (jnp.take);
    # it is a pure memory lookup with nothing to fuse at this size.
    x = jnp.take(embedding, input_ids.reshape(-1), axis=0)
    x = x.reshape(b, l, d_model).astype(jnp.float32)

    weights = list(stacked) + [norm_f_w]
    kernel = functools.partial(_mamba_model_kernel, n_layer=N_LAYER,
                               d_conv=D_CONV)
    io_spec = pl.BlockSpec((1, l, d_model), lambda i: (i, 0, 0))
    return pl.pallas_call(
        kernel,
        out_shape=jax.ShapeDtypeStruct((b, l, d_model), jnp.float32),
        grid=(b,),
        in_specs=[io_spec] + [pl.BlockSpec(w.shape, _const_map(w.ndim))
                              for w in weights],
        out_specs=io_spec,
        compiler_params=pltpu.CompilerParams(
            dimension_semantics=("parallel",)),   # v7x: one batch per TC
    )(x, *weights)


def _stack_for_kernel(layer_params):
    """Stack per-layer params along a leading layer axis, splitting the fused
    in_proj / x_proj weights into lane-aligned pieces."""
    stk = [jnp.stack([lp[i] for lp in layer_params], axis=0) for i in range(10)]
    (norm_w, in_w, conv_w, conv_b, x_proj_w, dt_w, dt_b, neg_a_t, dp, out_w) = stk
    return (norm_w,
            in_w[:, :, :D_INNER],                       # in_proj -> x
            in_w[:, :, D_INNER:],                       # in_proj -> res
            conv_w, conv_b,
            x_proj_w[:, :, :DT_RANK],                   # x_proj -> delta (low rank)
            x_proj_w[:, :, DT_RANK:DT_RANK + D_STATE],  # x_proj -> B
            x_proj_w[:, :, DT_RANK + D_STATE:],         # x_proj -> C
            dt_w, dt_b, neg_a_t, dp, out_w)


# =============================================================================
# Pure-JAX reference (mirrors the PyTorch module), for correctness check
# =============================================================================
def _rmsnorm_ref(x, w):
    return x * jax.lax.rsqrt(jnp.mean(x * x, axis=-1, keepdims=True) + EPS) * w


def _mamba_block_ref(x, lp):
    (_, in_w, conv_w, conv_b, x_proj_w, dt_w, dt_b, neg_A_t, Dp, out_w) = lp
    b, l, _ = x.shape
    d_conv, d_inner = conv_w.shape
    n = neg_A_t.shape[0]
    dt_rank = dt_w.shape[0]
    hi = jax.lax.Precision.HIGHEST

    xr = jnp.dot(x, in_w, precision=hi)
    xi, res = xr[..., :d_inner], xr[..., d_inner:]
    pad = jnp.pad(xi, ((0, 0), (d_conv - 1, 0), (0, 0)))
    conv = sum(pad[:, k:k + l, :] * conv_w[k][None, None, :]
               for k in range(d_conv)) + conv_b[None]
    xc = jax.nn.silu(conv)

    A = neg_A_t.T                                                # (d_inner, n)
    x_dbl = jnp.dot(xc, x_proj_w, precision=hi)
    delta = jax.nn.softplus(
        jnp.dot(x_dbl[..., :dt_rank], dt_w, precision=hi) + dt_b[None])
    Bm = x_dbl[..., dt_rank:dt_rank + n]
    Cm = x_dbl[..., dt_rank + n:]

    deltaA = jnp.exp(jnp.einsum('bld,dn->bldn', delta, A))
    deltaB_u = jnp.einsum('bld,bln,bld->bldn', delta, Bm, xc)
    state = jnp.zeros((b, d_inner, n), jnp.float32)
    ys = []
    for i in range(l):
        state = deltaA[:, i] * state + deltaB_u[:, i]
        ys.append(jnp.einsum('bdn,bn->bd', state, Cm[:, i, :], precision=hi))
    y = jnp.stack(ys, axis=1) + xc * Dp[None]
    y = y * jax.nn.silu(res)
    return jnp.dot(y, out_w, precision=hi)


def mamba_model_ref(input_ids, embedding, layer_params, norm_f_w):
    x = embedding[input_ids].astype(jnp.float32)                 # (b, l, d_model)
    for lp in layer_params:
        x = x + _mamba_block_ref(_rmsnorm_ref(x, lp[0]), lp)
    return _rmsnorm_ref(x, norm_f_w)


# =============================================================================
# Parameter construction + run
# =============================================================================
def _make_layer_params(key):
    ks = jax.random.split(key, 8)
    norm_w = 1.0 + 0.1 * jax.random.normal(ks[0], (1, D_MODEL), jnp.float32)
    in_w = 0.1 * jax.random.normal(ks[1], (D_MODEL, 2 * D_INNER), jnp.float32)
    # torch conv1d weight (d_inner, 1, d_conv) stored here as (d_conv, d_inner)
    conv_w = 0.3 * jax.random.normal(ks[2], (D_CONV, D_INNER), jnp.float32)
    conv_b = 0.05 * jax.random.normal(ks[3], (1, D_INNER), jnp.float32)
    x_proj_w = 0.1 * jax.random.normal(
        ks[4], (D_INNER, DT_RANK + 2 * D_STATE), jnp.float32)
    dt_w = 0.1 * jax.random.normal(ks[5], (DT_RANK, D_INNER), jnp.float32)
    dt_b = 0.05 * jax.random.normal(ks[6], (1, D_INNER), jnp.float32)
    A_log = jnp.broadcast_to(
        jnp.log(jnp.arange(1, D_STATE + 1, dtype=jnp.float32))[None, :],
        (D_INNER, D_STATE))
    neg_A_t = (-jnp.exp(A_log)).T                    # hoisted A: (n, d_inner)
    Dp = jnp.ones((1, D_INNER), jnp.float32)
    out_w = 0.1 * jax.random.normal(ks[7], (D_INNER, D_MODEL), jnp.float32)
    return (norm_w, in_w, conv_w, conv_b, x_proj_w, dt_w, dt_b,
            neg_A_t, Dp, out_w)


if __name__ == "__main__":
    root = jax.random.PRNGKey(0)
    k_ids, k_emb, k_normf, k_layers = jax.random.split(root, 4)

    input_ids = jax.random.randint(k_ids, (BATCH, SEQLEN), 0, VOCAB,
                                   dtype=jnp.int32)
    embedding = 0.5 * jax.random.normal(k_emb, (VOCAB, D_MODEL), jnp.float32)
    norm_f_w = 1.0 + 0.1 * jax.random.normal(k_normf, (1, D_MODEL), jnp.float32)
    layer_params = [
        _make_layer_params(k) for k in jax.random.split(k_layers, N_LAYER)]
    stacked = _stack_for_kernel(layer_params)

    out = jax.block_until_ready(
        mamba_model_forward(input_ids, embedding, stacked, norm_f_w))

    ref = jax.block_until_ready(
        mamba_model_ref(input_ids, embedding, layer_params, norm_f_w))

    np.testing.assert_allclose(np.asarray(out), np.asarray(ref),
                               rtol=1e-3, atol=1e-3)
    print("KERNEL_OK")
</pallas_src>

<mosaic_0001>
module attributes {stable_mosaic.version = 11 : i64} {
  func.func @_mamba_model_kernel(%arg0: i32, %arg1: memref<1x8x32xf32, #tpu.memory_space<vmem>>, %arg2: memref<2x1x32xf32, #tpu.memory_space<vmem>>, %arg3: memref<2x32x64xf32, #tpu.memory_space<vmem>>, %arg4: memref<2x32x64xf32, #tpu.memory_space<vmem>>, %arg5: memref<2x4x64xf32, #tpu.memory_space<vmem>>, %arg6: memref<2x1x64xf32, #tpu.memory_space<vmem>>, %arg7: memref<2x64x8xf32, #tpu.memory_space<vmem>>, %arg8: memref<2x64x16xf32, #tpu.memory_space<vmem>>, %arg9: memref<2x64x16xf32, #tpu.memory_space<vmem>>, %arg10: memref<2x8x64xf32, #tpu.memory_space<vmem>>, %arg11: memref<2x1x64xf32, #tpu.memory_space<vmem>>, %arg12: memref<2x16x64xf32, #tpu.memory_space<vmem>>, %arg13: memref<2x1x64xf32, #tpu.memory_space<vmem>>, %arg14: memref<2x64x32xf32, #tpu.memory_space<vmem>>, %arg15: memref<1x32xf32, #tpu.memory_space<vmem>>, %arg16: memref<1x8x32xf32, #tpu.memory_space<vmem>>) attributes {dimension_semantics = [#tpu.dimension_semantics<parallel>], iteration_bounds = array<i64: 2>, scalar_prefetch = 0 : i64, scratch_operands = 0 : i64, tpu.core_type = #tpu.core_type<tc>, window_params = [{transform_indices = @transform_0, window_bounds = array<i64: 1, 8, 32>}, {pipeline_mode = #tpu.pipeline_mode<synchronous>, transform_indices = @transform_1, window_bounds = array<i64: 2, 1, 32>}, {pipeline_mode = #tpu.pipeline_mode<synchronous>, transform_indices = @transform_2, window_bounds = array<i64: 2, 32, 64>}, {pipeline_mode = #tpu.pipeline_mode<synchronous>, transform_indices = @transform_3, window_bounds = array<i64: 2, 32, 64>}, {pipeline_mode = #tpu.pipeline_mode<synchronous>, transform_indices = @transform_4, window_bounds = array<i64: 2, 4, 64>}, {pipeline_mode = #tpu.pipeline_mode<synchronous>, transform_indices = @transform_5, window_bounds = array<i64: 2, 1, 64>}, {pipeline_mode = #tpu.pipeline_mode<synchronous>, transform_indices = @transform_6, window_bounds = array<i64: 2, 64, 8>}, {pipeline_mode = #tpu.pipeline_mode<synchronous>, transform_indices = @transform_7, window_bounds = array<i64: 2, 64, 16>}, {pipeline_mode = #tpu.pipeline_mode<synchronous>, transform_indices = @transform_8, window_bounds = array<i64: 2, 64, 16>}, {pipeline_mode = #tpu.pipeline_mode<synchronous>, transform_indices = @transform_9, window_bounds = array<i64: 2, 8, 64>}, {pipeline_mode = #tpu.pipeline_mode<synchronous>, transform_indices = @transform_10, window_bounds = array<i64: 2, 1, 64>}, {pipeline_mode = #tpu.pipeline_mode<synchronous>, transform_indices = @transform_11, window_bounds = array<i64: 2, 16, 64>}, {pipeline_mode = #tpu.pipeline_mode<synchronous>, transform_indices = @transform_12, window_bounds = array<i64: 2, 1, 64>}, {pipeline_mode = #tpu.pipeline_mode<synchronous>, transform_indices = @transform_13, window_bounds = array<i64: 2, 64, 32>}, {pipeline_mode = #tpu.pipeline_mode<synchronous>, transform_indices = @transform_14, window_bounds = array<i64: 1, 32>}, {transform_indices = @transform_15, window_bounds = array<i64: 1, 8, 32>}]} {
    %c0 = arith.constant 0 : index
    %c0_0 = arith.constant 0 : index
    %c0_1 = arith.constant 0 : index
    %0 = vector.load %arg1[%c0, %c0_0, %c0_1] : memref<1x8x32xf32, #tpu.memory_space<vmem>>, vector<1x8x32xf32>
    %1 = vector.shape_cast %0 : vector<1x8x32xf32> to vector<8x32xf32>
    %2 = tpu.iota {dimensions = array<i32: 0>} : vector<8x1xi32>
    %3 = arith.mulf %1, %1 : vector<8x32xf32>
    %cst = arith.constant dense<0.000000e+00> : vector<8xf32>
    %4 = vector.multi_reduction <add>, %3, %cst [1] : vector<8x32xf32> to vector<8xf32>
    %5 = vector.shape_cast %4 : vector<8xf32> to vector<8x1xf32>
    %cst_2 = arith.constant 3.200000e+01 : f32
    %6 = vector.broadcast %cst_2 : f32 to vector<8x1xf32>
    %7 = arith.divf %5, %6 : vector<8x1xf32>
    %cst_3 = arith.constant 9.99999974E-6 : f32
    %8 = vector.broadcast %cst_3 : f32 to vector<8x1xf32>
    %9 = arith.addf %7, %8 : vector<8x1xf32>
    %10 = math.rsqrt %9 : vector<8x1xf32>
    %11 = vector.broadcast %10 : vector<8x1xf32> to vector<8x32xf32>
    %12 = arith.mulf %1, %11 : vector<8x32xf32>
    %c0_4 = arith.constant 0 : index
    %c0_5 = arith.constant 0 : index
    %c0_6 = arith.constant 0 : index
    %13 = vector.load %arg2[%c0_4, %c0_5, %c0_6] : memref<2x1x32xf32, #tpu.memory_space<vmem>>, vector<1x1x32xf32>
    %14 = vector.shape_cast %13 : vector<1x1x32xf32> to vector<1x32xf32>
    %15 = vector.broadcast %14 : vector<1x32xf32> to vector<8x32xf32>
    %16 = arith.mulf %12, %15 : vector<8x32xf32>
    %c0_7 = arith.constant 0 : index
    %c0_8 = arith.constant 0 : index
    %c0_9 = arith.constant 0 : index
    %17 = vector.load %arg3[%c0_7, %c0_8, %c0_9] : memref<2x32x64xf32, #tpu.memory_space<vmem>>, vector<1x32x64xf32>
    %18 = vector.shape_cast %17 : vector<1x32x64xf32> to vector<32x64xf32>
    %cst_10 = arith.constant dense<0.000000e+00> : vector<8x64xf32>
    %19 = tpu.matmul %16, %18, %cst_10 {dimension_numbers = #tpu.dot_dimension_numbers<[1], [0], [0], [1], [0, 0, 1, 1], [], []>} : vector<8x32xf32>, vector<32x64xf32>, vector<8x64xf32> -> vector<8x64xf32>
    %c0_11 = arith.constant 0 : index
    %c0_12 = arith.constant 0 : index
    %c0_13 = arith.constant 0 : index
    %20 = vector.load %arg4[%c0_11, %c0_12, %c0_13] : memref<2x32x64xf32, #tpu.memory_space<vmem>>, vector<1x32x64xf32>
    %21 = vector.shape_cast %20 : vector<1x32x64xf32> to vector<32x64xf32>
    %cst_14 = arith.constant dense<0.000000e+00> : vector<8x64xf32>
    %22 = tpu.matmul %16, %21, %cst_14 {dimension_numbers = #tpu.dot_dimension_numbers<[1], [0], [0], [1], [0, 0, 1, 1], [], []>} : vector<8x32xf32>, vector<32x64xf32>, vector<8x64xf32> -> vector<8x64xf32>
    %c0_15 = arith.constant 0 : index
    %c0_16 = arith.constant 0 : index
    %c0_17 = arith.constant 0 : index
    %23 = vector.load %arg5[%c0_15, %c0_16, %c0_17] : memref<2x4x64xf32, #tpu.memory_space<vmem>>, vector<1x4x64xf32>
    %24 = vector.shape_cast %23 : vector<1x4x64xf32> to vector<4x64xf32>
    %25 = vector.extract_strided_slice %24 {offsets = [3, 0], sizes = [1, 64], strides = [1, 1]} : vector<4x64xf32> to vector<1x64xf32>
    %26 = vector.broadcast %25 : vector<1x64xf32> to vector<8x64xf32>
    %27 = arith.mulf %19, %26 : vector<8x64xf32>
    %c3_i32 = arith.constant 3 : i32
    %28 = tpu.dynamic_rotate %19 by %c3_i32 dim 0 : vector<8x64xf32>, i32 -> vector<8x64xf32>
    %c3_i32_18 = arith.constant 3 : i32
    %29 = vector.broadcast %c3_i32_18 : i32 to vector<8x1xi32>
    %30 = arith.cmpi sge, %2, %29 : vector<8x1xi32>
    %cst_19 = arith.constant 0.000000e+00 : f32
    %31 = vector.shape_cast %30 : vector<8x1xi1> to vector<8x1xi1>
    %32 = vector.broadcast %31 : vector<8x1xi1> to vector<8x64xi1>
    %33 = vector.broadcast %cst_19 : f32 to vector<8x64xf32>
    %34 = arith.select %32, %28, %33 : vector<8x64xi1>, vector<8x64xf32>
    %35 = vector.extract_strided_slice %24 {offsets = [0, 0], sizes = [1, 64], strides = [1, 1]} : vector<4x64xf32> to vector<1x64xf32>
    %36 = vector.broadcast %35 : vector<1x64xf32> to vector<8x64xf32>
    %37 = arith.mulf %34, %36 : vector<8x64xf32>
    %38 = arith.addf %27, %37 : vector<8x64xf32>
    %c2_i32 = arith.constant 2 : i32
    %39 = tpu.dynamic_rotate %19 by %c2_i32 dim 0 : vector<8x64xf32>, i32 -> vector<8x64xf32>
    %c2_i32_20 = arith.constant 2 : i32
    %40 = vector.broadcast %c2_i32_20 : i32 to vector<8x1xi32>
    %41 = arith.cmpi sge, %2, %40 : vector<8x1xi32>
    %cst_21 = arith.constant 0.000000e+00 : f32
    %42 = vector.shape_cast %41 : vector<8x1xi1> to vector<8x1xi1>
    %43 = vector.broadcast %42 : vector<8x1xi1> to vector<8x64xi1>
    %44 = vector.broadcast %cst_21 : f32 to vector<8x64xf32>
    %45 = arith.select %43, %39, %44 : vector<8x64xi1>, vector<8x64xf32>
    %46 = vector.extract_strided_slice %24 {offsets = [1, 0], sizes = [1, 64], strides = [1, 1]} : vector<4x64xf32> to vector<1x64xf32>
    %47 = vector.broadcast %46 : vector<1x64xf32> to vector<8x64xf32>
    %48 = arith.mulf %45, %47 : vector<8x64xf32>
    %49 = arith.addf %38, %48 : vector<8x64xf32>
    %c1_i32 = arith.constant 1 : i32
    %50 = tpu.dynamic_rotate %19 by %c1_i32 dim 0 : vector<8x64xf32>, i32 -> vector<8x64xf32>
    %c1_i32_22 = arith.constant 1 : i32
    %51 = vector.broadcast %c1_i32_22 : i32 to vector<8x1xi32>
    %52 = arith.cmpi sge, %2, %51 : vector<8x1xi32>
    %cst_23 = arith.constant 0.000000e+00 : f32
    %53 = vector.shape_cast %52 : vector<8x1xi1> to vector<8x1xi1>
    %54 = vector.broadcast %53 : vector<8x1xi1> to vector<8x64xi1>
    %55 = vector.broadcast %cst_23 : f32 to vector<8x64xf32>
    %56 = arith.select %54, %50, %55 : vector<8x64xi1>, vector<8x64xf32>
    %57 = vector.extract_strided_slice %24 {offsets = [2, 0], sizes = [1, 64], strides = [1, 1]} : vector<4x64xf32> to vector<1x64xf32>
    %58 = vector.broadcast %57 : vector<1x64xf32> to vector<8x64xf32>
    %59 = arith.mulf %56, %58 : vector<8x64xf32>
    %60 = arith.addf %49, %59 : vector<8x64xf32>
    %c0_24 = arith.constant 0 : index
    %c0_25 = arith.constant 0 : index
    %c0_26 = arith.constant 0 : index
    %61 = vector.load %arg6[%c0_24, %c0_25, %c0_26] : memref<2x1x64xf32, #tpu.memory_space<vmem>>, vector<1x1x64xf32>
    %62 = vector.shape_cast %61 : vector<1x1x64xf32> to vector<1x64xf32>
    %63 = vector.broadcast %62 : vector<1x64xf32> to vector<8x64xf32>
    %64 = arith.addf %60, %63 : vector<8x64xf32>
    %cst_27 = arith.constant 5.000000e-01 : f32
    %65 = vector.broadcast %cst_27 : f32 to vector<8x64xf32>
    %66 = arith.mulf %65, %64 : vector<8x64xf32>
    %67 = math.tanh %66 : vector<8x64xf32>
    %cst_28 = arith.constant 5.000000e-01 : f32
    %68 = vector.broadcast %cst_28 : f32 to vector<8x64xf32>
    %69 = arith.mulf %68, %67 : vector<8x64xf32>
    %cst_29 = arith.constant 5.000000e-01 : f32
    %70 = vector.broadcast %cst_29 : f32 to vector<8x64xf32>
    %71 = arith.addf %69, %70 : vector<8x64xf32>
    %72 = arith.mulf %64, %71 : vector<8x64xf32>
    %c0_30 = arith.constant 0 : index
    %c0_31 = arith.constant 0 : index
    %c0_32 = arith.constant 0 : index
    %73 = vector.load %arg7[%c0_30, %c0_31, %c0_32] : memref<2x64x8xf32, #tpu.memory_space<vmem>>, vector<1x64x8xf32>
    %74 = vector.shape_cast %73 : vector<1x64x8xf32> to vector<64x8xf32>
    %cst_33 = arith.constant dense<0.000000e+00> : vector<8x8xf32>
    %75 = tpu.matmul %72, %74, %cst_33 {dimension_numbers = #tpu.dot_dimension_numbers<[1], [0], [0], [1], [0, 0, 1, 1], [], []>} : vector<8x64xf32>, vector<64x8xf32>, vector<8x8xf32> -> vector<8x8xf32>
    %c0_34 = arith.constant 0 : index
    %c0_35 = arith.constant 0 : index
    %c0_36 = arith.constant 0 : index
    %76 = vector.load %arg8[%c0_34, %c0_35, %c0_36] : memref<2x64x16xf32, #tpu.memory_space<vmem>>, vector<1x64x16xf32>
    %77 = vector.shape_cast %76 : vector<1x64x16xf32> to vector<64x16xf32>
    %cst_37 = arith.constant dense<0.000000e+00> : vector<8x16xf32>
    %78 = tpu.matmul %72, %77, %cst_37 {dimension_numbers = #tpu.dot_dimension_numbers<[1], [0], [0], [1], [0, 0, 1, 1], [], []>} : vector<8x64xf32>, vector<64x16xf32>, vector<8x16xf32> -> vector<8x16xf32>
    %c0_38 = arith.constant 0 : index
    %c0_39 = arith.constant 0 : index
    %c0_40 = arith.constant 0 : index
    %79 = vector.load %arg9[%c0_38, %c0_39, %c0_40] : memref<2x64x16xf32, #tpu.memory_space<vmem>>, vector<1x64x16xf32>
    %80 = vector.shape_cast %79 : vector<1x64x16xf32> to vector<64x16xf32>
    %cst_41 = arith.constant dense<0.000000e+00> : vector<8x16xf32>
    %81 = tpu.matmul %72, %80, %cst_41 {dimension_numbers = #tpu.dot_dimension_numbers<[1], [0], [0], [1], [0, 0, 1, 1], [], []>} : vector<8x64xf32>, vector<64x16xf32>, vector<8x16xf32> -> vector<8x16xf32>
    %c0_42 = arith.constant 0 : index
    %c0_43 = arith.constant 0 : index
    %c0_44 = arith.constant 0 : index
    %82 = vector.load %arg10[%c0_42, %c0_43, %c0_44] : memref<2x8x64xf32, #tpu.memory_space<vmem>>, vector<1x8x64xf32>
    %83 = vector.shape_cast %82 : vector<1x8x64xf32> to vector<8x64xf32>
    %cst_45 = arith.constant dense<0.000000e+00> : vector<8x64xf32>
    %84 = tpu.matmul %75, %83, %cst_45 {dimension_numbers = #tpu.dot_dimension_numbers<[1], [0], [0], [1], [0, 0, 1, 1], [], []>} : vector<8x8xf32>, vector<8x64xf32>, vector<8x64xf32> -> vector<8x64xf32>
    %c0_46 = arith.constant 0 : index
    %c0_47 = arith.constant 0 : index
    %c0_48 = arith.constant 0 : index
    %85 = vector.load %arg11[%c0_46, %c0_47, %c0_48] : memref<2x1x64xf32, #tpu.memory_space<vmem>>, vector<1x1x64xf32>
    %86 = vector.shape_cast %85 : vector<1x1x64xf32> to vector<1x64xf32>
    %87 = vector.broadcast %86 : vector<1x64xf32> to vector<8x64xf32>
    %88 = arith.addf %84, %87 : vector<8x64xf32>
    %cst_49 = arith.constant 0.000000e+00 : f32
    %89 = vector.broadcast %cst_49 : f32 to vector<8x64xf32>
    %90 = arith.maximumf %88, %89 : vector<8x64xf32>
    %91 = math.absf %88 : vector<8x64xf32>
    %cst_50 = arith.constant 0.000000e+00 : f32
    %92 = vector.broadcast %cst_50 : f32 to vector<8x64xf32>
    %93 = arith.subf %92, %91 : vector<8x64xf32>
    %94 = math.exp %93 : vector<8x64xf32>
    %95 = math.log1p %94 : vector<8x64xf32>
    %96 = arith.addf %90, %95 : vector<8x64xf32>
    %c0_51 = arith.constant 0 : index
    %c0_52 = arith.constant 0 : index
    %c0_53 = arith.constant 0 : index
    %97 = vector.load %arg12[%c0_51, %c0_52, %c0_53] : memref<2x16x64xf32, #tpu.memory_space<vmem>>, vector<1x16x64xf32>
    %98 = vector.shape_cast %97 : vector<1x16x64xf32> to vector<16x64xf32>
    %99 = vector.shape_cast %96 : vector<8x64xf32> to vector<8x1x64xf32>
    %100 = vector.shape_cast %98 : vector<16x64xf32> to vector<1x16x64xf32>
    %101 = vector.broadcast %99 : vector<8x1x64xf32> to vector<8x16x64xf32>
    %102 = vector.broadcast %100 : vector<1x16x64xf32> to vector<8x16x64xf32>
    %103 = arith.mulf %101, %102 : vector<8x16x64xf32>
    %104 = math.exp %103 : vector<8x16x64xf32>
    %105 = arith.mulf %96, %72 : vector<8x64xf32>
    %106 = vector.shape_cast %105 : vector<8x64xf32> to vector<8x1x64xf32>
    %107 = vector.shape_cast %78 : vector<8x16xf32> to vector<8x16x1xf32>
    %108 = vector.broadcast %106 : vector<8x1x64xf32> to vector<8x16x64xf32>
    %109 = vector.broadcast %107 : vector<8x16x1xf32> to vector<8x16x64xf32>
    %110 = arith.mulf %108, %109 : vector<8x16x64xf32>
    %111 = vector.shape_cast %81 : vector<8x16xf32> to vector<8x16x1xf32>
    %cst_54 = arith.constant 0.000000e+00 : f32
    %112 = vector.broadcast %cst_54 : f32 to vector<16x64xf32>
    %113 = vector.extract_strided_slice %104 {offsets = [0, 0, 0], sizes = [1, 16, 64], strides = [1, 1, 1]} : vector<8x16x64xf32> to vector<1x16x64xf32>
    %114 = vector.shape_cast %113 : vector<1x16x64xf32> to vector<16x64xf32>
    %115 = arith.mulf %114, %112 : vector<16x64xf32>
    %116 = vector.extract_strided_slice %110 {offsets = [0, 0, 0], sizes = [1, 16, 64], strides = [1, 1, 1]} : vector<8x16x64xf32> to vector<1x16x64xf32>
    %117 = vector.shape_cast %116 : vector<1x16x64xf32> to vector<16x64xf32>
    %118 = arith.addf %115, %117 : vector<16x64xf32>
    %119 = vector.extract_strided_slice %111 {offsets = [0, 0, 0], sizes = [1, 16, 1], strides = [1, 1, 1]} : vector<8x16x1xf32> to vector<1x16x1xf32>
    %120 = vector.shape_cast %119 : vector<1x16x1xf32> to vector<16x1xf32>
    %121 = vector.broadcast %120 : vector<16x1xf32> to vector<16x64xf32>
    %122 = arith.mulf %118, %121 : vector<16x64xf32>
    %cst_55 = arith.constant dense<0.000000e+00> : vector<64xf32>
    %123 = vector.multi_reduction <add>, %122, %cst_55 [0] : vector<16x64xf32> to vector<64xf32>
    %124 = vector.shape_cast %123 : vector<64xf32> to vector<1x64xf32>
    %125 = vector.extract_strided_slice %104 {offsets = [1, 0, 0], sizes = [1, 16, 64], strides = [1, 1, 1]} : vector<8x16x64xf32> to vector<1x16x64xf32>
    %126 = vector.shape_cast %125 : vector<1x16x64xf32> to vector<16x64xf32>
    %127 = arith.mulf %126, %118 : vector<16x64xf32>
    %128 = vector.extract_strided_slice %110 {offsets = [1, 0, 0], sizes = [1, 16, 64], strides = [1, 1, 1]} : vector<8x16x64xf32> to vector<1x16x64xf32>
    %129 = vector.shape_cast %128 : vector<1x16x64xf32> to vector<16x64xf32>
    %130 = arith.addf %127, %129 : vector<16x64xf32>
    %131 = vector.extract_strided_slice %111 {offsets = [1, 0, 0], sizes = [1, 16, 1], strides = [1, 1, 1]} : vector<8x16x1xf32> to vector<1x16x1xf32>
    %132 = vector.shape_cast %131 : vector<1x16x1xf32> to vector<16x1xf32>
    %133 = vector.broadcast %132 : vector<16x1xf32> to vector<16x64xf32>
    %134 = arith.mulf %130, %133 : vector<16x64xf32>
    %cst_56 = arith.constant dense<0.000000e+00> : vector<64xf32>
    %135 = vector.multi_reduction <add>, %134, %cst_56 [0] : vector<16x64xf32> to vector<64xf32>
    %136 = vector.shape_cast %135 : vector<64xf32> to vector<1x64xf32>
    %137 = vector.extract_strided_slice %104 {offsets = [2, 0, 0], sizes = [1, 16, 64], strides = [1, 1, 1]} : vector<8x16x64xf32> to vector<1x16x64xf32>
    %138 = vector.shape_cast %137 : vector<1x16x64xf32> to vector<16x64xf32>
    %139 = arith.mulf %138, %130 : vector<16x64xf32>
    %140 = vector.extract_strided_slice %110 {offsets = [2, 0, 0], sizes = [1, 16, 64], strides = [1, 1, 1]} : vector<8x16x64xf32> to vector<1x16x64xf32>
    %141 = vector.shape_cast %140 : vector<1x16x64xf32> to vector<16x64xf32>
    %142 = arith.addf %139, %141 : vector<16x64xf32>
    %143 = vector.extract_strided_slice %111 {offsets = [2, 0, 0], sizes = [1, 16, 1], strides = [1, 1, 1]} : vector<8x16x1xf32> to vector<1x16x1xf32>
    %144 = vector.shape_cast %143 : vector<1x16x1xf32> to vector<16x1xf32>
    %145 = vector.broadcast %144 : vector<16x1xf32> to vector<16x64xf32>
    %146 = arith.mulf %142, %145 : vector<16x64xf32>
    %cst_57 = arith.constant dense<0.000000e+00> : vector<64xf32>
    %147 = vector.multi_reduction <add>, %146, %cst_57 [0] : vector<16x64xf32> to vector<64xf32>
    %148 = vector.shape_cast %147 : vector<64xf32> to vector<1x64xf32>
    %149 = vector.extract_strided_slice %104 {offsets = [3, 0, 0], sizes = [1, 16, 64], strides = [1, 1, 1]} : vector<8x16x64xf32> to vector<1x16x64xf32>
    %150 = vector.shape_cast %149 : vector<1x16x64xf32> to vector<16x64xf32>
    %151 = arith.mulf %150, %142 : vector<16x64xf32>
    %152 = vector.extract_strided_slice %110 {offsets = [3, 0, 0], sizes = [1, 16, 64], strides = [1, 1, 1]} : vector<8x16x64xf32> to vector<1x16x64xf32>
    %153 = vector.shape_cast %152 : vector<1x16x64xf32> to vector<16x64xf32>
    %154 = arith.addf %151, %153 : vector<16x64xf32>
    %155 = vector.extract_strided_slice %111 {offsets = [3, 0, 0], sizes = [1, 16, 1], strides = [1, 1, 1]} : vector<8x16x1xf32> to vector<1x16x1xf32>
    %156 = vector.shape_cast %155 : vector<1x16x1xf32> to vector<16x1xf32>
    %157 = vector.broadcast %156 : vector<16x1xf32> to vector<16x64xf32>
    %158 = arith.mulf %154, %157 : vector<16x64xf32>
    %cst_58 = arith.constant dense<0.000000e+00> : vector<64xf32>
    %159 = vector.multi_reduction <add>, %158, %cst_58 [0] : vector<16x64xf32> to vector<64xf32>
    %160 = vector.shape_cast %159 : vector<64xf32> to vector<1x64xf32>
    %161 = vector.extract_strided_slice %104 {offsets = [4, 0, 0], sizes = [1, 16, 64], strides = [1, 1, 1]} : vector<8x16x64xf32> to vector<1x16x64xf32>
    %162 = vector.shape_cast %161 : vector<1x16x64xf32> to vector<16x64xf32>
    %163 = arith.mulf %162, %154 : vector<16x64xf32>
    %164 = vector.extract_strided_slice %110 {offsets = [4, 0, 0], sizes = [1, 16, 64], strides = [1, 1, 1]} : vector<8x16x64xf32> to vector<1x16x64xf32>
    %165 = vector.shape_cast %164 : vector<1x16x64xf32> to vector<16x64xf32>
    %166 = arith.addf %163, %165 : vector<16x64xf32>
    %167 = vector.extract_strided_slice %111 {offsets = [4, 0, 0], sizes = [1, 16, 1], strides = [1, 1, 1]} : vector<8x16x1xf32> to vector<1x16x1xf32>
    %168 = vector.shape_cast %167 : vector<1x16x1xf32> to vector<16x1xf32>
    %169 = vector.broadcast %168 : vector<16x1xf32> to vector<16x64xf32>
    %170 = arith.mulf %166, %169 : vector<16x64xf32>
    %cst_59 = arith.constant dense<0.000000e+00> : vector<64xf32>
    %171 = vector.multi_reduction <add>, %170, %cst_59 [0] : vector<16x64xf32> to vector<64xf32>
    %172 = vector.shape_cast %171 : vector<64xf32> to vector<1x64xf32>
    %173 = vector.extract_strided_slice %104 {offsets = [5, 0, 0], sizes = [1, 16, 64], strides = [1, 1, 1]} : vector<8x16x64xf32> to vector<1x16x64xf32>
    %174 = vector.shape_cast %173 : vector<1x16x64xf32> to vector<16x64xf32>
    %175 = arith.mulf %174, %166 : vector<16x64xf32>
    %176 = vector.extract_strided_slice %110 {offsets = [5, 0, 0], sizes = [1, 16, 64], strides = [1, 1, 1]} : vector<8x16x64xf32> to vector<1x16x64xf32>
    %177 = vector.shape_cast %176 : vector<1x16x64xf32> to vector<16x64xf32>
    %178 = arith.addf %175, %177 : vector<16x64xf32>
    %179 = vector.extract_strided_slice %111 {offsets = [5, 0, 0], sizes = [1, 16, 1], strides = [1, 1, 1]} : vector<8x16x1xf32> to vector<1x16x1xf32>
    %180 = vector.shape_cast %179 : vector<1x16x1xf32> to vector<16x1xf32>
    %181 = vector.broadcast %180 : vector<16x1xf32> to vector<16x64xf32>
    %182 = arith.mulf %178, %181 : vector<16x64xf32>
    %cst_60 = arith.constant dense<0.000000e+00> : vector<64xf32>
    %183 = vector.multi_reduction <add>, %182, %cst_60 [0] : vector<16x64xf32> to vector<64xf32>
    %184 = vector.shape_cast %183 : vector<64xf32> to vector<1x64xf32>
    %185 = vector.extract_strided_slice %104 {offsets = [6, 0, 0], sizes = [1, 16, 64], strides = [1, 1, 1]} : vector<8x16x64xf32> to vector<1x16x64xf32>
    %186 = vector.shape_cast %185 : vector<1x16x64xf32> to vector<16x64xf32>
    %187 = arith.mulf %186, %178 : vector<16x64xf32>
    %188 = vector.extract_strided_slice %110 {offsets = [6, 0, 0], sizes = [1, 16, 64], strides = [1, 1, 1]} : vector<8x16x64xf32> to vector<1x16x64xf32>
    %189 = vector.shape_cast %188 : vector<1x16x64xf32> to vector<16x64xf32>
    %190 = arith.addf %187, %189 : vector<16x64xf32>
    %191 = vector.extract_strided_slice %111 {offsets = [6, 0, 0], sizes = [1, 16, 1], strides = [1, 1, 1]} : vector<8x16x1xf32> to vector<1x16x1xf32>
    %192 = vector.shape_cast %191 : vector<1x16x1xf32> to vector<16x1xf32>
    %193 = vector.broadcast %192 : vector<16x1xf32> to vector<16x64xf32>
    %194 = arith.mulf %190, %193 : vector<16x64xf32>
    %cst_61 = arith.constant dense<0.000000e+00> : vector<64xf32>
    %195 = vector.multi_reduction <add>, %194, %cst_61 [0] : vector<16x64xf32> to vector<64xf32>
    %196 = vector.shape_cast %195 : vector<64xf32> to vector<1x64xf32>
    %197 = vector.extract_strided_slice %104 {offsets = [7, 0, 0], sizes = [1, 16, 64], strides = [1, 1, 1]} : vector<8x16x64xf32> to vector<1x16x64xf32>
    %198 = vector.shape_cast %197 : vector<1x16x64xf32> to vector<16x64xf32>
    %199 = arith.mulf %198, %190 : vector<16x64xf32>
    %200 = vector.extract_strided_slice %110 {offsets = [7, 0, 0], sizes = [1, 16, 64], strides = [1, 1, 1]} : vector<8x16x64xf32> to vector<1x16x64xf32>
    %201 = vector.shape_cast %200 : vector<1x16x64xf32> to vector<16x64xf32>
    %202 = arith.addf %199, %201 : vector<16x64xf32>
    %203 = vector.extract_strided_slice %111 {offsets = [7, 0, 0], sizes = [1, 16, 1], strides = [1, 1, 1]} : vector<8x16x1xf32> to vector<1x16x1xf32>
    %204 = vector.shape_cast %203 : vector<1x16x1xf32> to vector<16x1xf32>
    %205 = vector.broadcast %204 : vector<16x1xf32> to vector<16x64xf32>
    %206 = arith.mulf %202, %205 : vector<16x64xf32>
    %cst_62 = arith.constant dense<0.000000e+00> : vector<64xf32>
    %207 = vector.multi_reduction <add>, %206, %cst_62 [0] : vector<16x64xf32> to vector<64xf32>
    %208 = vector.shape_cast %207 : vector<64xf32> to vector<1x64xf32>
    %209 = tpu.concatenate %124, %136, %148, %160, %172, %184, %196, %208 in 0 : vector<1x64xf32>, vector<1x64xf32>, vector<1x64xf32>, vector<1x64xf32>, vector<1x64xf32>, vector<1x64xf32>, vector<1x64xf32>, vector<1x64xf32> -> vector<8x64xf32>
    %c0_63 = arith.constant 0 : index
    %c0_64 = arith.constant 0 : index
    %c0_65 = arith.constant 0 : index
    %210 = vector.load %arg13[%c0_63, %c0_64, %c0_65] : memref<2x1x64xf32, #tpu.memory_space<vmem>>, vector<1x1x64xf32>
    %211 = vector.shape_cast %210 : vector<1x1x64xf32> to vector<1x64xf32>
    %212 = vector.broadcast %211 : vector<1x64xf32> to vector<8x64xf32>
    %213 = arith.mulf %72, %212 : vector<8x64xf32>
    %214 = arith.addf %209, %213 : vector<8x64xf32>
    %cst_66 = arith.constant 5.000000e-01 : f32
    %215 = vector.broadcast %cst_66 : f32 to vector<8x64xf32>
    %216 = arith.mulf %215, %22 : vector<8x64xf32>
    %217 = math.tanh %216 : vector<8x64xf32>
    %cst_67 = arith.constant 5.000000e-01 : f32
    %218 = vector.broadcast %cst_67 : f32 to vector<8x64xf32>
    %219 = arith.mulf %218, %217 : vector<8x64xf32>
    %cst_68 = arith.constant 5.000000e-01 : f32
    %220 = vector.broadcast %cst_68 : f32 to vector<8x64xf32>
    %221 = arith.addf %219, %220 : vector<8x64xf32>
    %222 = arith.mulf %22, %221 : vector<8x64xf32>
    %223 = arith.mulf %214, %222 : vector<8x64xf32>
    %c0_69 = arith.constant 0 : index
    %c0_70 = arith.constant 0 : index
    %c0_71 = arith.constant 0 : index
    %224 = vector.load %arg14[%c0_69, %c0_70, %c0_71] : memref<2x64x32xf32, #tpu.memory_space<vmem>>, vector<1x64x32xf32>
    %225 = vector.shape_cast %224 : vector<1x64x32xf32> to vector<64x32xf32>
    %cst_72 = arith.constant dense<0.000000e+00> : vector<8x32xf32>
    %226 = tpu.matmul %223, %225, %cst_72 {dimension_numbers = #tpu.dot_dimension_numbers<[1], [0], [0], [1], [0, 0, 1, 1], [], []>} : vector<8x64xf32>, vector<64x32xf32>, vector<8x32xf32> -> vector<8x32xf32>
    %227 = arith.addf %1, %226 : vector<8x32xf32>
    %228 = arith.mulf %227, %227 : vector<8x32xf32>
    %cst_73 = arith.constant dense<0.000000e+00> : vector<8xf32>
    %229 = vector.multi_reduction <add>, %228, %cst_73 [1] : vector<8x32xf32> to vector<8xf32>
    %230 = vector.shape_cast %229 : vector<8xf32> to vector<8x1xf32>
    %cst_74 = arith.constant 3.200000e+01 : f32
    %231 = vector.broadcast %cst_74 : f32 to vector<8x1xf32>
    %232 = arith.divf %230, %231 : vector<8x1xf32>
    %cst_75 = arith.constant 9.99999974E-6 : f32
    %233 = vector.broadcast %cst_75 : f32 to vector<8x1xf32>
    %234 = arith.addf %232, %233 : vector<8x1xf32>
    %235 = math.rsqrt %234 : vector<8x1xf32>
    %236 = vector.broadcast %235 : vector<8x1xf32> to vector<8x32xf32>
    %237 = arith.mulf %227, %236 : vector<8x32xf32>
    %c1 = arith.constant 1 : index
    %c0_76 = arith.constant 0 : index
    %c0_77 = arith.constant 0 : index
    %238 = vector.load %arg2[%c1, %c0_76, %c0_77] : memref<2x1x32xf32, #tpu.memory_space<vmem>>, vector<1x1x32xf32>
    %239 = vector.shape_cast %238 : vector<1x1x32xf32> to vector<1x32xf32>
    %240 = vector.broadcast %239 : vector<1x32xf32> to vector<8x32xf32>
    %241 = arith.mulf %237, %240 : vector<8x32xf32>
    %c1_78 = arith.constant 1 : index
    %c0_79 = arith.constant 0 : index
    %c0_80 = arith.constant 0 : index
    %242 = vector.load %arg3[%c1_78, %c0_79, %c0_80] : memref<2x32x64xf32, #tpu.memory_space<vmem>>, vector<1x32x64xf32>
    %243 = vector.shape_cast %242 : vector<1x32x64xf32> to vector<32x64xf32>
    %cst_81 = arith.constant dense<0.000000e+00> : vector<8x64xf32>
    %244 = tpu.matmul %241, %243, %cst_81 {dimension_numbers = #tpu.dot_dimension_numbers<[1], [0], [0], [1], [0, 0, 1, 1], [], []>} : vector<8x32xf32>, vector<32x64xf32>, vector<8x64xf32> -> vector<8x64xf32>
    %c1_82 = arith.constant 1 : index
    %c0_83 = arith.constant 0 : index
    %c0_84 = arith.constant 0 : index
    %245 = vector.load %arg4[%c1_82, %c0_83, %c0_84] : memref<2x32x64xf32, #tpu.memory_space<vmem>>, vector<1x32x64xf32>
    %246 = vector.shape_cast %245 : vector<1x32x64xf32> to vector<32x64xf32>
    %cst_85 = arith.constant dense<0.000000e+00> : vector<8x64xf32>
    %247 = tpu.matmul %241, %246, %cst_85 {dimension_numbers = #tpu.dot_dimension_numbers<[1], [0], [0], [1], [0, 0, 1, 1], [], []>} : vector<8x32xf32>, vector<32x64xf32>, vector<8x64xf32> -> vector<8x64xf32>
    %c1_86 = arith.constant 1 : index
    %c0_87 = arith.constant 0 : index
    %c0_88 = arith.constant 0 : index
    %248 = vector.load %arg5[%c1_86, %c0_87, %c0_88] : memref<2x4x64xf32, #tpu.memory_space<vmem>>, vector<1x4x64xf32>
    %249 = vector.shape_cast %248 : vector<1x4x64xf32> to vector<4x64xf32>
    %250 = vector.extract_strided_slice %249 {offsets = [3, 0], sizes = [1, 64], strides = [1, 1]} : vector<4x64xf32> to vector<1x64xf32>
    %251 = vector.broadcast %250 : vector<1x64xf32> to vector<8x64xf32>
    %252 = arith.mulf %244, %251 : vector<8x64xf32>
    %c3_i32_89 = arith.constant 3 : i32
    %253 = tpu.dynamic_rotate %244 by %c3_i32_89 dim 0 : vector<8x64xf32>, i32 -> vector<8x64xf32>
    %c3_i32_90 = arith.constant 3 : i32
    %254 = vector.broadcast %c3_i32_90 : i32 to vector<8x1xi32>
    %255 = arith.cmpi sge, %2, %254 : vector<8x1xi32>
    %cst_91 = arith.constant 0.000000e+00 : f32
    %256 = vector.shape_cast %255 : vector<8x1xi1> to vector<8x1xi1>
    %257 = vector.broadcast %256 : vector<8x1xi1> to vector<8x64xi1>
    %258 = vector.broadcast %cst_91 : f32 to vector<8x64xf32>
    %259 = arith.select %257, %253, %258 : vector<8x64xi1>, vector<8x64xf32>
    %260 = vector.extract_strided_slice %249 {offsets = [0, 0], sizes = [1, 64], strides = [1, 1]} : vector<4x64xf32> to vector<1x64xf32>
    %261 = vector.broadcast %260 : vector<1x64xf32> to vector<8x64xf32>
    %262 = arith.mulf %259, %261 : vector<8x64xf32>
    %263 = arith.addf %252, %262 : vector<8x64xf32>
    %c2_i32_92 = arith.constant 2 : i32
    %264 = tpu.dynamic_rotate %244 by %c2_i32_92 dim 0 : vector<8x64xf32>, i32 -> vector<8x64xf32>
    %c2_i32_93 = arith.constant 2 : i32
    %265 = vector.broadcast %c2_i32_93 : i32 to vector<8x1xi32>
    %266 = arith.cmpi sge, %2, %265 : vector<8x1xi32>
    %cst_94 = arith.constant 0.000000e+00 : f32
    %267 = vector.shape_cast %266 : vector<8x1xi1> to vector<8x1xi1>
    %268 = vector.broadcast %267 : vector<8x1xi1> to vector<8x64xi1>
    %269 = vector.broadcast %cst_94 : f32 to vector<8x64xf32>
    %270 = arith.select %268, %264, %269 : vector<8x64xi1>, vector<8x64xf32>
    %271 = vector.extract_strided_slice %249 {offsets = [1, 0], sizes = [1, 64], strides = [1, 1]} : vector<4x64xf32> to vector<1x64xf32>
    %272 = vector.broadcast %271 : vector<1x64xf32> to vector<8x64xf32>
    %273 = arith.mulf %270, %272 : vector<8x64xf32>
    %274 = arith.addf %263, %273 : vector<8x64xf32>
    %c1_i32_95 = arith.constant 1 : i32
    %275 = tpu.dynamic_rotate %244 by %c1_i32_95 dim 0 : vector<8x64xf32>, i32 -> vector<8x64xf32>
    %c1_i32_96 = arith.constant 1 : i32
    %276 = vector.broadcast %c1_i32_96 : i32 to vector<8x1xi32>
    %277 = arith.cmpi sge, %2, %276 : vector<8x1xi32>
    %cst_97 = arith.constant 0.000000e+00 : f32
    %278 = vector.shape_cast %277 : vector<8x1xi1> to vector<8x1xi1>
    %279 = vector.broadcast %278 : vector<8x1xi1> to vector<8x64xi1>
    %280 = vector.broadcast %cst_97 : f32 to vector<8x64xf32>
    %281 = arith.select %279, %275, %280 : vector<8x64xi1>, vector<8x64xf32>
    %282 = vector.extract_strided_slice %249 {offsets = [2, 0], sizes = [1, 64], strides = [1, 1]} : vector<4x64xf32> to vector<1x64xf32>
    %283 = vector.broadcast %282 : vector<1x64xf32> to vector<8x64xf32>
    %284 = arith.mulf %281, %283 : vector<8x64xf32>
    %285 = arith.addf %274, %284 : vector<8x64xf32>
    %c1_98 = arith.constant 1 : index
    %c0_99 = arith.constant 0 : index
    %c0_100 = arith.constant 0 : index
    %286 = vector.load %arg6[%c1_98, %c0_99, %c0_100] : memref<2x1x64xf32, #tpu.memory_space<vmem>>, vector<1x1x64xf32>
    %287 = vector.shape_cast %286 : vector<1x1x64xf32> to vector<1x64xf32>
    %288 = vector.broadcast %287 : vector<1x64xf32> to vector<8x64xf32>
    %289 = arith.addf %285, %288 : vector<8x64xf32>
    %cst_101 = arith.constant 5.000000e-01 : f32
    %290 = vector.broadcast %cst_101 : f32 to vector<8x64xf32>
    %291 = arith.mulf %290, %289 : vector<8x64xf32>
    %292 = math.tanh %291 : vector<8x64xf32>
    %cst_102 = arith.constant 5.000000e-01 : f32
    %293 = vector.broadcast %cst_102 : f32 to vector<8x64xf32>
    %294 = arith.mulf %293, %292 : vector<8x64xf32>
    %cst_103 = arith.constant 5.000000e-01 : f32
    %295 = vector.broadcast %cst_103 : f32 to vector<8x64xf32>
    %296 = arith.addf %294, %295 : vector<8x64xf32>
    %297 = arith.mulf %289, %296 : vector<8x64xf32>
    %c1_104 = arith.constant 1 : index
    %c0_105 = arith.constant 0 : index
    %c0_106 = arith.constant 0 : index
    %298 = vector.load %arg7[%c1_104, %c0_105, %c0_106] : memref<2x64x8xf32, #tpu.memory_space<vmem>>, vector<1x64x8xf32>
    %299 = vector.shape_cast %298 : vector<1x64x8xf32> to vector<64x8xf32>
    %cst_107 = arith.constant dense<0.000000e+00> : vector<8x8xf32>
    %300 = tpu.matmul %297, %299, %cst_107 {dimension_numbers = #tpu.dot_dimension_numbers<[1], [0], [0], [1], [0, 0, 1, 1], [], []>} : vector<8x64xf32>, vector<64x8xf32>, vector<8x8xf32> -> vector<8x8xf32>
    %c1_108 = arith.constant 1 : index
    %c0_109 = arith.constant 0 : index
    %c0_110 = arith.constant 0 : index
    %301 = vector.load %arg8[%c1_108, %c0_109, %c0_110] : memref<2x64x16xf32, #tpu.memory_space<vmem>>, vector<1x64x16xf32>
    %302 = vector.shape_cast %301 : vector<1x64x16xf32> to vector<64x16xf32>
    %cst_111 = arith.constant dense<0.000000e+00> : vector<8x16xf32>
    %303 = tpu.matmul %297, %302, %cst_111 {dimension_numbers = #tpu.dot_dimension_numbers<[1], [0], [0], [1], [0, 0, 1, 1], [], []>} : vector<8x64xf32>, vector<64x16xf32>, vector<8x16xf32> -> vector<8x16xf32>
    %c1_112 = arith.constant 1 : index
    %c0_113 = arith.constant 0 : index
    %c0_114 = arith.constant 0 : index
    %304 = vector.load %arg9[%c1_112, %c0_113, %c0_114] : memref<2x64x16xf32, #tpu.memory_space<vmem>>, vector<1x64x16xf32>
    %305 = vector.shape_cast %304 : vector<1x64x16xf32> to vector<64x16xf32>
    %cst_115 = arith.constant dense<0.000000e+00> : vector<8x16xf32>
    %306 = tpu.matmul %297, %305, %cst_115 {dimension_numbers = #tpu.dot_dimension_numbers<[1], [0], [0], [1], [0, 0, 1, 1], [], []>} : vector<8x64xf32>, vector<64x16xf32>, vector<8x16xf32> -> vector<8x16xf32>
    %c1_116 = arith.constant 1 : index
    %c0_117 = arith.constant 0 : index
    %c0_118 = arith.constant 0 : index
    %307 = vector.load %arg10[%c1_116, %c0_117, %c0_118] : memref<2x8x64xf32, #tpu.memory_space<vmem>>, vector<1x8x64xf32>
    %308 = vector.shape_cast %307 : vector<1x8x64xf32> to vector<8x64xf32>
    %cst_119 = arith.constant dense<0.000000e+00> : vector<8x64xf32>
    %309 = tpu.matmul %300, %308, %cst_119 {dimension_numbers = #tpu.dot_dimension_numbers<[1], [0], [0], [1], [0, 0, 1, 1], [], []>} : vector<8x8xf32>, vector<8x64xf32>, vector<8x64xf32> -> vector<8x64xf32>
    %c1_120 = arith.constant 1 : index
    %c0_121 = arith.constant 0 : index
    %c0_122 = arith.constant 0 : index
    %310 = vector.load %arg11[%c1_120, %c0_121, %c0_122] : memref<2x1x64xf32, #tpu.memory_space<vmem>>, vector<1x1x64xf32>
    %311 = vector.shape_cast %310 : vector<1x1x64xf32> to vector<1x64xf32>
    %312 = vector.broadcast %311 : vector<1x64xf32> to vector<8x64xf32>
    %313 = arith.addf %309, %312 : vector<8x64xf32>
    %cst_123 = arith.constant 0.000000e+00 : f32
    %314 = vector.broadcast %cst_123 : f32 to vector<8x64xf32>
    %315 = arith.maximumf %313, %314 : vector<8x64xf32>
    %316 = math.absf %313 : vector<8x64xf32>
    %cst_124 = arith.constant 0.000000e+00 : f32
    %317 = vector.broadcast %cst_124 : f32 to vector<8x64xf32>
    %318 = arith.subf %317, %316 : vector<8x64xf32>
    %319 = math.exp %318 : vector<8x64xf32>
    %320 = math.log1p %319 : vector<8x64xf32>
    %321 = arith.addf %315, %320 : vector<8x64xf32>
    %c1_125 = arith.constant 1 : index
    %c0_126 = arith.constant 0 : index
    %c0_127 = arith.constant 0 : index
    %322 = vector.load %arg12[%c1_125, %c0_126, %c0_127] : memref<2x16x64xf32, #tpu.memory_space<vmem>>, vector<1x16x64xf32>
    %323 = vector.shape_cast %322 : vector<1x16x64xf32> to vector<16x64xf32>
    %324 = vector.shape_cast %321 : vector<8x64xf32> to vector<8x1x64xf32>
    %325 = vector.shape_cast %323 : vector<16x64xf32> to vector<1x16x64xf32>
    %326 = vector.broadcast %324 : vector<8x1x64xf32> to vector<8x16x64xf32>
    %327 = vector.broadcast %325 : vector<1x16x64xf32> to vector<8x16x64xf32>
    %328 = arith.mulf %326, %327 : vector<8x16x64xf32>
    %329 = math.exp %328 : vector<8x16x64xf32>
    %330 = arith.mulf %321, %297 : vector<8x64xf32>
    %331 = vector.shape_cast %330 : vector<8x64xf32> to vector<8x1x64xf32>
    %332 = vector.shape_cast %303 : vector<8x16xf32> to vector<8x16x1xf32>
    %333 = vector.broadcast %331 : vector<8x1x64xf32> to vector<8x16x64xf32>
    %334 = vector.broadcast %332 : vector<8x16x1xf32> to vector<8x16x64xf32>
    %335 = arith.mulf %333, %334 : vector<8x16x64xf32>
    %336 = vector.shape_cast %306 : vector<8x16xf32> to vector<8x16x1xf32>
    %cst_128 = arith.constant 0.000000e+00 : f32
    %337 = vector.broadcast %cst_128 : f32 to vector<16x64xf32>
    %338 = vector.extract_strided_slice %329 {offsets = [0, 0, 0], sizes = [1, 16, 64], strides = [1, 1, 1]} : vector<8x16x64xf32> to vector<1x16x64xf32>
    %339 = vector.shape_cast %338 : vector<1x16x64xf32> to vector<16x64xf32>
    %340 = arith.mulf %339, %337 : vector<16x64xf32>
    %341 = vector.extract_strided_slice %335 {offsets = [0, 0, 0], sizes = [1, 16, 64], strides = [1, 1, 1]} : vector<8x16x64xf32> to vector<1x16x64xf32>
    %342 = vector.shape_cast %341 : vector<1x16x64xf32> to vector<16x64xf32>
    %343 = arith.addf %340, %342 : vector<16x64xf32>
    %344 = vector.extract_strided_slice %336 {offsets = [0, 0, 0], sizes = [1, 16, 1], strides = [1, 1, 1]} : vector<8x16x1xf32> to vector<1x16x1xf32>
    %345 = vector.shape_cast %344 : vector<1x16x1xf32> to vector<16x1xf32>
    %346 = vector.broadcast %345 : vector<16x1xf32> to vector<16x64xf32>
    %347 = arith.mulf %343, %346 : vector<16x64xf32>
    %cst_129 = arith.constant dense<0.000000e+00> : vector<64xf32>
    %348 = vector.multi_reduction <add>, %347, %cst_129 [0] : vector<16x64xf32> to vector<64xf32>
    %349 = vector.shape_cast %348 : vector<64xf32> to vector<1x64xf32>
    %350 = vector.extract_strided_slice %329 {offsets = [1, 0, 0], sizes = [1, 16, 64], strides = [1, 1, 1]} : vector<8x16x64xf32> to vector<1x16x64xf32>
    %351 = vector.shape_cast %350 : vector<1x16x64xf32> to vector<16x64xf32>
    %352 = arith.mulf %351, %343 : vector<16x64xf32>
    %353 = vector.extract_strided_slice %335 {offsets = [1, 0, 0], sizes = [1, 16, 64], strides = [1, 1, 1]} : vector<8x16x64xf32> to vector<1x16x64xf32>
    %354 = vector.shape_cast %353 : vector<1x16x64xf32> to vector<16x64xf32>
    %355 = arith.addf %352, %354 : vector<16x64xf32>
    %356 = vector.extract_strided_slice %336 {offsets = [1, 0, 0], sizes = [1, 16, 1], strides = [1, 1, 1]} : vector<8x16x1xf32> to vector<1x16x1xf32>
    %357 = vector.shape_cast %356 : vector<1x16x1xf32> to vector<16x1xf32>
    %358 = vector.broadcast %357 : vector<16x1xf32> to vector<16x64xf32>
    %359 = arith.mulf %355, %358 : vector<16x64xf32>
    %cst_130 = arith.constant dense<0.000000e+00> : vector<64xf32>
    %360 = vector.multi_reduction <add>, %359, %cst_130 [0] : vector<16x64xf32> to vector<64xf32>
    %361 = vector.shape_cast %360 : vector<64xf32> to vector<1x64xf32>
    %362 = vector.extract_strided_slice %329 {offsets = [2, 0, 0], sizes = [1, 16, 64], strides = [1, 1, 1]} : vector<8x16x64xf32> to vector<1x16x64xf32>
    %363 = vector.shape_cast %362 : vector<1x16x64xf32> to vector<16x64xf32>
    %364 = arith.mulf %363, %355 : vector<16x64xf32>
    %365 = vector.extract_strided_slice %335 {offsets = [2, 0, 0], sizes = [1, 16, 64], strides = [1, 1, 1]} : vector<8x16x64xf32> to vector<1x16x64xf32>
    %366 = vector.shape_cast %365 : vector<1x16x64xf32> to vector<16x64xf32>
    %367 = arith.addf %364, %366 : vector<16x64xf32>
    %368 = vector.extract_strided_slice %336 {offsets = [2, 0, 0], sizes = [1, 16, 1], strides = [1, 1, 1]} : vector<8x16x1xf32> to vector<1x16x1xf32>
    %369 = vector.shape_cast %368 : vector<1x16x1xf32> to vector<16x1xf32>
    %370 = vector.broadcast %369 : vector<16x1xf32> to vector<16x64xf32>
    %371 = arith.mulf %367, %370 : vector<16x64xf32>
    %cst_131 = arith.constant dense<0.000000e+00> : vector<64xf32>
    %372 = vector.multi_reduction <add>, %371, %cst_131 [0] : vector<16x64xf32> to vector<64xf32>
    %373 = vector.shape_cast %372 : vector<64xf32> to vector<1x64xf32>
    %374 = vector.extract_strided_slice %329 {offsets = [3, 0, 0], sizes = [1, 16, 64], strides = [1, 1, 1]} : vector<8x16x64xf32> to vector<1x16x64xf32>
    %375 = vector.shape_cast %374 : vector<1x16x64xf32> to vector<16x64xf32>
    %376 = arith.mulf %375, %367 : vector<16x64xf32>
    %377 = vector.extract_strided_slice %335 {offsets = [3, 0, 0], sizes = [1, 16, 64], strides = [1, 1, 1]} : vector<8x16x64xf32> to vector<1x16x64xf32>
    %378 = vector.shape_cast %377 : vector<1x16x64xf32> to vector<16x64xf32>
    %379 = arith.addf %376, %378 : vector<16x64xf32>
    %380 = vector.extract_strided_slice %336 {offsets = [3, 0, 0], sizes = [1, 16, 1], strides = [1, 1, 1]} : vector<8x16x1xf32> to vector<1x16x1xf32>
    %381 = vector.shape_cast %380 : vector<1x16x1xf32> to vector<16x1xf32>
    %382 = vector.broadcast %381 : vector<16x1xf32> to vector<16x64xf32>
    %383 = arith.mulf %379, %382 : vector<16x64xf32>
    %cst_132 = arith.constant dense<0.000000e+00> : vector<64xf32>
    %384 = vector.multi_reduction <add>, %383, %cst_132 [0] : vector<16x64xf32> to vector<64xf32>
    %385 = vector.shape_cast %384 : vector<64xf32> to vector<1x64xf32>
    %386 = vector.extract_strided_slice %329 {offsets = [4, 0, 0], sizes = [1, 16, 64], strides = [1, 1, 1]} : vector<8x16x64xf32> to vector<1x16x64xf32>
    %387 = vector.shape_cast %386 : vector<1x16x64xf32> to vector<16x64xf32>
    %388 = arith.mulf %387, %379 : vector<16x64xf32>
    %389 = vector.extract_strided_slice %335 {offsets = [4, 0, 0], sizes = [1, 16, 64], strides = [1, 1, 1]} : vector<8x16x64xf32> to vector<1x16x64xf32>
    %390 = vector.shape_cast %389 : vector<1x16x64xf32> to vector<16x64xf32>
    %391 = arith.addf %388, %390 : vector<16x64xf32>
    %392 = vector.extract_strided_slice %336 {offsets = [4, 0, 0], sizes = [1, 16, 1], strides = [1, 1, 1]} : vector<8x16x1xf32> to vector<1x16x1xf32>
    %393 = vector.shape_cast %392 : vector<1x16x1xf32> to vector<16x1xf32>
    %394 = vector.broadcast %393 : vector<16x1xf32> to vector<16x64xf32>
    %395 = arith.mulf %391, %394 : vector<16x64xf32>
    %cst_133 = arith.constant dense<0.000000e+00> : vector<64xf32>
    %396 = vector.multi_reduction <add>, %395, %cst_133 [0] : vector<16x64xf32> to vector<64xf32>
    %397 = vector.shape_cast %396 : vector<64xf32> to vector<1x64xf32>
    %398 = vector.extract_strided_slice %329 {offsets = [5, 0, 0], sizes = [1, 16, 64], strides = [1, 1, 1]} : vector<8x16x64xf32> to vector<1x16x64xf32>
    %399 = vector.shape_cast %398 : vector<1x16x64xf32> to vector<16x64xf32>
    %400 = arith.mulf %399, %391 : vector<16x64xf32>
    %401 = vector.extract_strided_slice %335 {offsets = [5, 0, 0], sizes = [1, 16, 64], strides = [1, 1, 1]} : vector<8x16x64xf32> to vector<1x16x64xf32>
    %402 = vector.shape_cast %401 : vector<1x16x64xf32> to vector<16x64xf32>
    %403 = arith.addf %400, %402 : vector<16x64xf32>
    %404 = vector.extract_strided_slice %336 {offsets = [5, 0, 0], sizes = [1, 16, 1], strides = [1, 1, 1]} : vector<8x16x1xf32> to vector<1x16x1xf32>
    %405 = vector.shape_cast %404 : vector<1x16x1xf32> to vector<16x1xf32>
    %406 = vector.broadcast %405 : vector<16x1xf32> to vector<16x64xf32>
    %407 = arith.mulf %403, %406 : vector<16x64xf32>
    %cst_134 = arith.constant dense<0.000000e+00> : vector<64xf32>
    %408 = vector.multi_reduction <add>, %407, %cst_134 [0] : vector<16x64xf32> to vector<64xf32>
    %409 = vector.shape_cast %408 : vector<64xf32> to vector<1x64xf32>
    %410 = vector.extract_strided_slice %329 {offsets = [6, 0, 0], sizes = [1, 16, 64], strides = [1, 1, 1]} : vector<8x16x64xf32> to vector<1x16x64xf32>
    %411 = vector.shape_cast %410 : vector<1x16x64xf32> to vector<16x64xf32>
    %412 = arith.mulf %411, %403 : vector<16x64xf32>
    %413 = vector.extract_strided_slice %335 {offsets = [6, 0, 0], sizes = [1, 16, 64], strides = [1, 1, 1]} : vector<8x16x64xf32> to vector<1x16x64xf32>
    %414 = vector.shape_cast %413 : vector<1x16x64xf32> to vector<16x64xf32>
    %415 = arith.addf %412, %414 : vector<16x64xf32>
    %416 = vector.extract_strided_slice %336 {offsets = [6, 0, 0], sizes = [1, 16, 1], strides = [1, 1, 1]} : vector<8x16x1xf32> to vector<1x16x1xf32>
    %417 = vector.shape_cast %416 : vector<1x16x1xf32> to vector<16x1xf32>
    %418 = vector.broadcast %417 : vector<16x1xf32> to vector<16x64xf32>
    %419 = arith.mulf %415, %418 : vector<16x64xf32>
    %cst_135 = arith.constant dense<0.000000e+00> : vector<64xf32>
    %420 = vector.multi_reduction <add>, %419, %cst_135 [0] : vector<16x64xf32> to vector<64xf32>
    %421 = vector.shape_cast %420 : vector<64xf32> to vector<1x64xf32>
    %422 = vector.extract_strided_slice %329 {offsets = [7, 0, 0], sizes = [1, 16, 64], strides = [1, 1, 1]} : vector<8x16x64xf32> to vector<1x16x64xf32>
    %423 = vector.shape_cast %422 : vector<1x16x64xf32> to vector<16x64xf32>
    %424 = arith.mulf %423, %415 : vector<16x64xf32>
    %425 = vector.extract_strided_slice %335 {offsets = [7, 0, 0], sizes = [1, 16, 64], strides = [1, 1, 1]} : vector<8x16x64xf32> to vector<1x16x64xf32>
    %426 = vector.shape_cast %425 : vector<1x16x64xf32> to vector<16x64xf32>
    %427 = arith.addf %424, %426 : vector<16x64xf32>
    %428 = vector.extract_strided_slice %336 {offsets = [7, 0, 0], sizes = [1, 16, 1], strides = [1, 1, 1]} : vector<8x16x1xf32> to vector<1x16x1xf32>
    %429 = vector.shape_cast %428 : vector<1x16x1xf32> to vector<16x1xf32>
    %430 = vector.broadcast %429 : vector<16x1xf32> to vector<16x64xf32>
    %431 = arith.mulf %427, %430 : vector<16x64xf32>
    %cst_136 = arith.constant dense<0.000000e+00> : vector<64xf32>
    %432 = vector.multi_reduction <add>, %431, %cst_136 [0] : vector<16x64xf32> to vector<64xf32>
    %433 = vector.shape_cast %432 : vector<64xf32> to vector<1x64xf32>
    %434 = tpu.concatenate %349, %361, %373, %385, %397, %409, %421, %433 in 0 : vector<1x64xf32>, vector<1x64xf32>, vector<1x64xf32>, vector<1x64xf32>, vector<1x64xf32>, vector<1x64xf32>, vector<1x64xf32>, vector<1x64xf32> -> vector<8x64xf32>
    %c1_137 = arith.constant 1 : index
    %c0_138 = arith.constant 0 : index
    %c0_139 = arith.constant 0 : index
    %435 = vector.load %arg13[%c1_137, %c0_138, %c0_139] : memref<2x1x64xf32, #tpu.memory_space<vmem>>, vector<1x1x64xf32>
    %436 = vector.shape_cast %435 : vector<1x1x64xf32> to vector<1x64xf32>
    %437 = vector.broadcast %436 : vector<1x64xf32> to vector<8x64xf32>
    %438 = arith.mulf %297, %437 : vector<8x64xf32>
    %439 = arith.addf %434, %438 : vector<8x64xf32>
    %cst_140 = arith.constant 5.000000e-01 : f32
    %440 = vector.broadcast %cst_140 : f32 to vector<8x64xf32>
    %441 = arith.mulf %440, %247 : vector<8x64xf32>
    %442 = math.tanh %441 : vector<8x64xf32>
    %cst_141 = arith.constant 5.000000e-01 : f32
    %443 = vector.broadcast %cst_141 : f32 to vector<8x64xf32>
    %444 = arith.mulf %443, %442 : vector<8x64xf32>
    %cst_142 = arith.constant 5.000000e-01 : f32
    %445 = vector.broadcast %cst_142 : f32 to vector<8x64xf32>
    %446 = arith.addf %444, %445 : vector<8x64xf32>
    %447 = arith.mulf %247, %446 : vector<8x64xf32>
    %448 = arith.mulf %439, %447 : vector<8x64xf32>
    %c1_143 = arith.constant 1 : index
    %c0_144 = arith.constant 0 : index
    %c0_145 = arith.constant 0 : index
    %449 = vector.load %arg14[%c1_143, %c0_144, %c0_145] : memref<2x64x32xf32, #tpu.memory_space<vmem>>, vector<1x64x32xf32>
    %450 = vector.shape_cast %449 : vector<1x64x32xf32> to vector<64x32xf32>
    %cst_146 = arith.constant dense<0.000000e+00> : vector<8x32xf32>
    %451 = tpu.matmul %448, %450, %cst_146 {dimension_numbers = #tpu.dot_dimension_numbers<[1], [0], [0], [1], [0, 0, 1, 1], [], []>} : vector<8x64xf32>, vector<64x32xf32>, vector<8x32xf32> -> vector<8x32xf32>
    %452 = arith.addf %227, %451 : vector<8x32xf32>
    %453 = arith.mulf %452, %452 : vector<8x32xf32>
    %cst_147 = arith.constant dense<0.000000e+00> : vector<8xf32>
    %454 = vector.multi_reduction <add>, %453, %cst_147 [1] : vector<8x32xf32> to vector<8xf32>
    %455 = vector.shape_cast %454 : vector<8xf32> to vector<8x1xf32>
    %cst_148 = arith.constant 3.200000e+01 : f32
    %456 = vector.broadcast %cst_148 : f32 to vector<8x1xf32>
    %457 = arith.divf %455, %456 : vector<8x1xf32>
    %cst_149 = arith.constant 9.99999974E-6 : f32
    %458 = vector.broadcast %cst_149 : f32 to vector<8x1xf32>
    %459 = arith.addf %457, %458 : vector<8x1xf32>
    %460 = math.rsqrt %459 : vector<8x1xf32>
    %461 = vector.broadcast %460 : vector<8x1xf32> to vector<8x32xf32>
    %462 = arith.mulf %452, %461 : vector<8x32xf32>
    %c0_150 = arith.constant 0 : index
    %c0_151 = arith.constant 0 : index
    %463 = vector.load %arg15[%c0_150, %c0_151] : memref<1x32xf32, #tpu.memory_space<vmem>>, vector<1x32xf32>
    %464 = vector.broadcast %463 : vector<1x32xf32> to vector<8x32xf32>
    %465 = arith.mulf %462, %464 : vector<8x32xf32>
    %c0_152 = arith.constant 0 : index
    %c0_153 = arith.constant 0 : index
    %c0_154 = arith.constant 0 : index
    %466 = vector.load %arg16[%c0_152, %c0_153, %c0_154] : memref<1x8x32xf32, #tpu.memory_space<vmem>>, vector<1x8x32xf32>
    %467 = vector.shape_cast %466 : vector<1x8x32xf32> to vector<8x32xf32>
    %468 = vector.shape_cast %465 : vector<8x32xf32> to vector<1x8x32xf32>
    tpu.vector_store %arg16[%c0_152, %c0_153, %c0_154], %468 {strides = array<i32>} : memref<1x8x32xf32, #tpu.memory_space<vmem>>, vector<1x8x32xf32>,
    return
  }
  func.func @transform_0(%arg0: i32) -> (i32, i32, i32) {
    %c0_i32 = arith.constant 0 : i32
    %c0_i32_0 = arith.constant 0 : i32
    %c0_i32_1 = arith.constant 0 : i32
    return %arg0, %c0_i32, %c0_i32_0 : i32, i32, i32
  }
  func.func @transform_1(%arg0: i32) -> (i32, i32, i32) {
    %c0_i32 = arith.constant 0 : i32
    %c0_i32_0 = arith.constant 0 : i32
    %c0_i32_1 = arith.constant 0 : i32
    %c0_i32_2 = arith.constant 0 : i32
    return %c0_i32, %c0_i32_0, %c0_i32_1 : i32, i32, i32
  }
  func.func @transform_2(%arg0: i32) -> (i32, i32, i32) {
    %c0_i32 = arith.constant 0 : i32
    %c0_i32_0 = arith.constant 0 : i32
    %c0_i32_1 = arith.constant 0 : i32
    %c0_i32_2 = arith.constant 0 : i32
    return %c0_i32, %c0_i32_0, %c0_i32_1 : i32, i32, i32
  }
  func.func @transform_3(%arg0: i32) -> (i32, i32, i32) {
    %c0_i32 = arith.constant 0 : i32
    %c0_i32_0 = arith.constant 0 : i32
    %c0_i32_1 = arith.constant 0 : i32
    %c0_i32_2 = arith.constant 0 : i32
    return %c0_i32, %c0_i32_0, %c0_i32_1 : i32, i32, i32
  }
  func.func @transform_4(%arg0: i32) -> (i32, i32, i32) {
    %c0_i32 = arith.constant 0 : i32
    %c0_i32_0 = arith.constant 0 : i32
    %c0_i32_1 = arith.constant 0 : i32
    %c0_i32_2 = arith.constant 0 : i32
    return %c0_i32, %c0_i32_0, %c0_i32_1 : i32, i32, i32
  }
  func.func @transform_5(%arg0: i32) -> (i32, i32, i32) {
    %c0_i32 = arith.constant 0 : i32
    %c0_i32_0 = arith.constant 0 : i32
    %c0_i32_1 = arith.constant 0 : i32
    %c0_i32_2 = arith.constant 0 : i32
    return %c0_i32, %c0_i32_0, %c0_i32_1 : i32, i32, i32
  }
  func.func @transform_6(%arg0: i32) -> (i32, i32, i32) {
    %c0_i32 = arith.constant 0 : i32
    %c0_i32_0 = arith.constant 0 : i32
    %c0_i32_1 = arith.constant 0 : i32
    %c0_i32_2 = arith.constant 0 : i32
    return %c0_i32, %c0_i32_0, %c0_i32_1 : i32, i32, i32
  }
  func.func @transform_7(%arg0: i32) -> (i32, i32, i32) {
    %c0_i32 = arith.constant 0 : i32
    %c0_i32_0 = arith.constant 0 : i32
    %c0_i32_1 = arith.constant 0 : i32
    %c0_i32_2 = arith.constant 0 : i32
    return %c0_i32, %c0_i32_0, %c0_i32_1 : i32, i32, i32
  }
  func.func @transform_8(%arg0: i32) -> (i32, i32, i32) {
    %c0_i32 = arith.constant 0 : i32
    %c0_i32_0 = arith.constant 0 : i32
    %c0_i32_1 = arith.constant 0 : i32
    %c0_i32_2 = arith.constant 0 : i32
    return %c0_i32, %c0_i32_0, %c0_i32_1 : i32, i32, i32
  }
  func.func @transform_9(%arg0: i32) -> (i32, i32, i32) {
    %c0_i32 = arith.constant 0 : i32
    %c0_i32_0 = arith.constant 0 : i32
    %c0_i32_1 = arith.constant 0 : i32
    %c0_i32_2 = arith.constant 0 : i32
    return %c0_i32, %c0_i32_0, %c0_i32_1 : i32, i32, i32
  }
  func.func @transform_10(%arg0: i32) -> (i32, i32, i32) {
    %c0_i32 = arith.constant 0 : i32
    %c0_i32_0 = arith.constant 0 : i32
    %c0_i32_1 = arith.constant 0 : i32
    %c0_i32_2 = arith.constant 0 : i32
    return %c0_i32, %c0_i32_0, %c0_i32_1 : i32, i32, i32
  }
  func.func @transform_11(%arg0: i32) -> (i32, i32, i32) {
    %c0_i32 = arith.constant 0 : i32
    %c0_i32_0 = arith.constant 0 : i32
    %c0_i32_1 = arith.constant 0 : i32
    %c0_i32_2 = arith.constant 0 : i32
    return %c0_i32, %c0_i32_0, %c0_i32_1 : i32, i32, i32
  }
  func.func @transform_12(%arg0: i32) -> (i32, i32, i32) {
    %c0_i32 = arith.constant 0 : i32
    %c0_i32_0 = arith.constant 0 : i32
    %c0_i32_1 = arith.constant 0 : i32
    %c0_i32_2 = arith.constant 0 : i32
    return %c0_i32, %c0_i32_0, %c0_i32_1 : i32, i32, i32
  }
  func.func @transform_13(%arg0: i32) -> (i32, i32, i32) {
    %c0_i32 = arith.constant 0 : i32
    %c0_i32_0 = arith.constant 0 : i32
    %c0_i32_1 = arith.constant 0 : i32
    %c0_i32_2 = arith.constant 0 : i32
    return %c0_i32, %c0_i32_0, %c0_i32_1 : i32, i32, i32
  }
  func.func @transform_14(%arg0: i32) -> (i32, i32) {
    %c0_i32 = arith.constant 0 : i32
    %c0_i32_0 = arith.constant 0 : i32
    %c0_i32_1 = arith.constant 0 : i32
    return %c0_i32, %c0_i32_0 : i32, i32
  }
  func.func @transform_15(%arg0: i32) -> (i32, i32, i32) {
    %c0_i32 = arith.constant 0 : i32
    %c0_i32_0 = arith.constant 0 : i32
    %c0_i32_1 = arith.constant 0 : i32
    return %arg0, %c0_i32, %c0_i32_0 : i32, i32, i32
  }
}

</mosaic_0001>

<bundles_post_ra>
// kernel: mamba_model_forward.1
= control target key start
LH: loop header
LB: loop body
LE: loop exit
PB: predicated region body
PF: predicated region fallthrough
CT: control target
= control target key end

     0   :  { %s4552_s0 = inlined_call_operand.vmem [shape: f32[2,8,32], index: 0, kind: input, shape index: {}]   ;;  %s4553_s1 = inlined_call_operand.vmem [shape: f32[2,1,32], index: 1, kind: input, shape index: {}]   ;;  %s4554_s2 = inlined_call_operand.vmem [shape: f32[2,32,64], index: 2, kind: input, shape index: {}]   ;;  %s4555_s3 = inlined_call_operand.vmem [shape: f32[2,32,64], index: 3, kind: input, shape index: {}]   ;;  %s4556_s4 = inlined_call_operand.vmem [shape: f32[2,4,64], index: 4, kind: input, shape index: {}]   ;;  %s4557_s5 = inlined_call_operand.vmem [shape: f32[2,1,64], index: 5, kind: input, shape index: {}]   ;;  %s4558_s6 = inlined_call_operand.vmem [shape: f32[2,64,8], index: 6, kind: input, shape index: {}]   ;;  %s4559_s7 = inlined_call_operand.vmem [shape: f32[2,64,16], index: 7, kind: input, shape index: {}]   ;;  %s4560_s8 = inlined_call_operand.vmem [shape: f32[2,64,16], index: 8, kind: input, shape index: {}]   ;;  %s4561_s9 = inlined_call_operand.vmem [shape: f32[2,8,64], index: 9, kind: input, shape index: {}]   ;;  %s4562_s10 = inlined_call_operand.vmem [shape: f32[2,1,64], index: 10, kind: input, shape index: {}]   ;;  %s4563_s11 = inlined_call_operand.vmem [shape: f32[2,16,64], index: 11, kind: input, shape index: {}]   ;;  %s4564_s12 = inlined_call_operand.vmem [shape: f32[2,1,64], index: 12, kind: input, shape index: {}]   ;;  %s4565_s13 = inlined_call_operand.vmem [shape: f32[2,64,32], index: 13, kind: input, shape index: {}]   ;;  %s4566_s14 = inlined_call_operand.vmem [shape: f32[1,32], index: 14, kind: input, shape index: {}]   ;;  %s4567_s15 = inlined_call_operand.hbm [shape: f32[2,8,32], index: 15, kind: output, shape index: {}]  }
   0x1   :  { %4574 = sst [smem:[#allocation9_spill]] %s4552_s0 }
   0x2   :  { %4575 = sst [smem:[#allocation10_spill]] %s4553_s1 }
   0x3   :  { %20 = vsyncpa [#allocation3], 0 }
   0x4   :  { %22 = vsyncpa [#allocation3 + $0x1], 0  ;;  %s3654_s18 = smov 0   ;;  %s3656_s19 = smov 0  }
   0x5   :  { %s3658_s20 = smov 0   ;;  %s3660_s21 = smov 0  }
   0x6 LB: > { %4576 = sst [smem:[#allocation5_spill]] %s3564_s20  ;;  %s3675_s22 = sadd.s32 4294967295, %s3568_s21   ;;  %s3568_s21 = sphi %s3660_s21, %s4586_s21   ;;  %s3564_s20 = sphi %s3658_s20, %s4588_s20   ;;  %s3560_s19 = sphi %s3656_s19, %s4590_s19   ;;  %s3556_s18 = sphi %s3654_s18, %s4589_s18  }
   0x7   : > { %s2996_s23 = sadd.s32 4294967294, %s3568_s21   ;;  %s3679_s24 = sadd.s32 1, %s3568_s21  }
   0x8   : > { %4577 = sst [smem:[#allocation6_spill]] %s3679_s24  ;;  %s355_s25 = sadd.s32 1, %s3564_s20 }
   0x9   : > { %s352_s26 = ssub.s32 %s3568_s21, %s3679_s24  ;;  %p365_p0 = scmp.ne.s32.totalorder %s3564_s20, %s3560_s19 }
   0xa   : > { %p353_p1 = scmp.eq.s32.totalorder %s352_s26, 0  ;;  %p366_p2 = scmp.eq.s32.totalorder %s3675_s22, 1 }
   0xb   : > { %p371_p3 = scmp.ne.s32.totalorder %s3560_s19, %s3556_s18  ;;  %p372_p4 = scmp.eq.s32.totalorder %s2996_s23, 1 }
   0xc   : > { %s3690_s27 = scalar_select %p353_p1, %s3564_s20, %s355_s25  }
   0xd   : > { %p3692_p5 = por %p366_p2, %p365_p0  ;;  %p3696_p6 = por %p372_p4, %p371_p3 }
   0xe   : > { %4578 = sst [smem:[#allocation7_spill]] %s3690_s27  ;;  %p2999_p7 = scmp.ge.s32.totalorder %s3568_s21, 1 }
   0xf   : > { %s4580_s29 = scalar_select %p3696_p6, 1, 0 }
  0x10   : > { %p439_p8 = scmp.lt.s32.totalorder %s3568_s21, 3 }
  0x11   : > { %4581 = sst [smem:[#allocation8_spill]] %s4580_s29 }
  0x12   : > { %p440_p9 = pnand %p2999_p7, %p439_p8 }
  0x13   : > { %p486_p10 = scmp.lt.s32.totalorder (!%p440_p9), %s3675_s22, 1  ;;  %s4582_s0 = sld [smem:[#allocation9_spill]] (!%p440_p9) }
  0x14   : > { %443 = sbr.rel (%p440_p9) target bundleno = 2394 (0x95a), region = 80  ;;  %s4583_s1 = sld [smem:[#allocation10_spill]] (!%p440_p9) }
  0x15   : > { %s3074_s24 = sshll.u32 (!%p440_p9), %s3675_s22, 7  ;;  %s3573_s23 = smov (!%p440_p9), [#allocation2]  }
  0x16   : > { %s3512_s20 = sshll.u32 (!%p440_p9), %s3573_s23, 4  ;;  %s3513_s20 = int_to_ptr.vmem [resolvable:$false] %s3512_s20 }
  0x19   : > { %s487_s30 = scalar_select %p486_p10, %s3675_s22, 1  ;;  %vm494_vm0 = vcmask 261120   ;;  %v514_v3 = vld [vmem:[%s4554_s2 + $0x18] sm:$0xff]  ;;  %v4572_v5 = vmov 0.0   ;;  %v513_v6 = vld [vmem:[%s4554_s2 + $0x10] sm:$0xff]  ;;  %v512_v8 = vld [vmem:[%s4554_s2 + $0x8] sm:$0xff]  ;;  %v491_v35 = vlaneseq }
  0x1a   : > { %v591_v4 = vld [vmem:[%s4555_s3 + $0x18] sm:$0xff]  ;;  %3173 = vmatprep.subr.mxu0 %v4572_v5  ;;  %3184 = vmatprep.subr.mxu1 %v4572_v5  ;;  %v590_v7 = vld [vmem:[%s4555_s3 + $0x10] sm:$0xff]  ;;  %v589_v9 = vld [vmem:[%s4555_s3 + $0x8] sm:$0xff]  ;;  %vm3571_vm1 = vmmov 0   ;;  %vm722_vm5 = vcmask 523264   ;;  %vm960_vm6 = vcmask 64512  }
  0x1b   : > { %s3001_s16 = sshll.u32 %s487_s30, 3  ;;  %3174 = vmatpush3.msra.mxu0 %v514_v3  ;;  %3185 = vmatpush3.msra.mxu1 %v591_v4  ;;  %v511_v10 = vld [vmem:[%s4554_s2] sm:$0xff]  ;;  %v721_v19 = vld [vmem:[%s4558_s6 + $0x38] sm:$0xff]  ;;  %v720_v21 = vld [vmem:[%s4558_s6 + $0x30] sm:$0xff]  ;;  %v3822_v36 = vshrl.u32 %v491_v35, 7  ;;  %vm1592_vm8 = vcmask 1040384  }
  0x1c   : > { %s3707_s25 = scalar_lea.vmem %s4582_s0, %s3001_s16  ;;  %3175 = vmatprep.subr.mxu0 %v4572_v5  ;;  %3186 = vmatprep.subr.mxu1 %v4572_v5  ;;  %v588_v11 = vld [vmem:[%s4555_s3] sm:$0xff]  ;;  %v803_v20 = vld [vmem:[%s4559_s7 + $0x38] sm:$0xff]  ;;  %v802_v22 = vld [vmem:[%s4559_s7 + $0x30] sm:$0xff]  ;;  %vm1594_vm9 = vcmask 1041408   ;;  %vm1596_vm10 = vcmask 1042432   ;;  %vm1598_vm11 = vcmask 1043456  }
  0x1d   : > { %v490_v0 = vld [vmem:[%s3707_s25] sm:$0xff]  ;;  %3176 = vmatpush3.msra.mxu0 %v513_v6  ;;  %3187 = vmatpush3.msra.mxu1 %v590_v7  ;;  %v719_v23 = vld [vmem:[%s4558_s6 + $0x28] sm:$0xff]  ;;  %v717_v27 = vld [vmem:[%s4558_s6 + $0x18] sm:$0xff]  ;;  %v3825_v37 = vsub.s32 3, %v3822_v36  ;;  %v3831_v39 = vsub.s32 0, %v3822_v36  ;;  %v3834_v40 = vsub.s32 1, %v3822_v36 }
  0x1e   : > { %v493_v1 = vmul.f32 %v490_v0, %v490_v0  ;;  %3177 = vmatprep.subr.mxu0 %v4572_v5  ;;  %3188 = vmatprep.subr.mxu1 %v4572_v5  ;;  %v3002_v16 = vld [vmem:[%s4583_s1] ss:$0 sm:$0xff]  ;;  %v801_v24 = vld [vmem:[%s4559_s7 + $0x28] sm:$0xff]  ;;  %v799_v28 = vld [vmem:[%s4559_s7 + $0x18] sm:$0xff]  ;;  %vm669_vm2 = vcmp.ge.s32.totalorder %v3822_v36, 3  ;;  %vm680_vm3 = vcmp.ge.s32.totalorder %v3822_v36, 2 }
  0x1f   : > { %3178 = vmatpush3.msra.mxu0 %v512_v8  ;;  %3189 = vmatpush3.msra.mxu1 %v589_v9  ;;  %v718_v25 = vld [vmem:[%s4558_s6 + $0x20] sm:$0xff]  ;;  %v716_v29 = vld [vmem:[%s4558_s6 + $0x10] sm:$0xff]  ;;  %v715_v31 = vld [vmem:[%s4558_s6 + $0x8] sm:$0xff]  ;;  %v3841_v44 = vsub.s32 2, %v3822_v36  ;;  %vm691_vm4 = vcmp.ge.s32.totalorder %v3822_v36, 1  ;;  %vm1600_vm12 = vcmask 1044480  }
  0x20   : > { %v495_v2 = vsel %vm494_vm0, %v493_v1, 0.0  ;;  %3179 = vmatprep.subr.mxu0 %v4572_v5  ;;  %3190 = vmatprep.subr.mxu1 %v4572_v5  ;;  %v800_v26 = vld [vmem:[%s4559_s7 + $0x20] sm:$0xff]  ;;  %v798_v30 = vld [vmem:[%s4559_s7 + $0x10] sm:$0xff]  ;;  %v797_v32 = vld [vmem:[%s4559_s7 + $0x8] sm:$0xff]  ;;  %vm1602_vm13 = vcmask 1045504   ;;  %vm1604_vm14 = vcmask 1046528  }
  0x21   : > { %496 = vadd.xlane.f32.xlu0 %v495_v2  ;;  %3180 = vmatpush3.msra.mxu0 %v511_v10  ;;  %v714_v33 = vld [vmem:[%s4558_s6] sm:$0xff]  ;;  %v881_v7 = vld [vmem:[%s4560_s8 + $0x38] sm:$0xff]  ;;  %v880_v8 = vld [vmem:[%s4560_s8 + $0x30] sm:$0xff]  ;;  %s483_s0 = sand.u32 1, %s3560_s19   ;;  %s3514_s22 = scalar_lea.vmem %s3513_s20, 256 }
  0x22   : > { %3181 = vmatprep.mubr.msk.f32.mxu0 %vm3571_vm1, %v4572_v5  ;;  %3191 = vmatpush3.msra.mxu1 %v588_v11  ;;  %v796_v34 = vld [vmem:[%s4559_s7] sm:$0xff]  ;;  %v879_v9 = vld [vmem:[%s4560_s8 + $0x28] sm:$0xff]  ;;  %v877_v11 = vld [vmem:[%s4560_s8 + $0x18] sm:$0xff]  ;;  %s3000_s29 = sshll.u32 %s483_s0, 3  ;;  %s2924_s17 = scalar_lea.sflag [#allocation3], %s483_s0 }
  0x23   : > { %3192 = vmatprep.mubr.msk.f32.mxu1 %vm3571_vm1, %v4572_v5  ;;  %3195 = vmatprep.subr.mxu0 %v4572_v5  ;;  %v662_v38 = vld [vmem:[%s4556_s4] sm:$0xf]  ;;  %s485_s27 = scalar_lea.vmem [#allocation2], %s3000_s29 }
  0x24   : > { %3214 = vmatprep.subr.mxu1 %v4572_v5  ;;  %v666_v41 = vrot.slane %v662_v38, %v3825_v37  ;;  %v676_v43 = vrot.slane %v662_v38, %v3831_v39  ;;  %v687_v49 = vrot.slane %v662_v38, %v3834_v40  ;;  %v698_v56 = vrot.slane %v662_v38, %v3841_v44  ;;  %v3005_v62 = vld [vmem:[%s4557_s5] ss:$0 sm:$0xff]  ;;  %s2937_s26 = sshll.u32 %s485_s27, 4  ;;  %s2938_s26 = int_to_ptr.vmem [resolvable:$true] %s2937_s26 }
  0x25   : > { %v878_v10 = vld [vmem:[%s4560_s8 + $0x20] sm:$0xff]  ;;  %p3515_p0 = scmp.lt.s32.totalorder %s2938_s26, %s3513_s20 }
  0xaa   : > { %v497_v12 = vpop.xlane.xlu0 %496 }
  0xab   : > { %v499_v13 = vmul.f32 0.03125, %v497_v12  ;;  %v876_v12 = vld [vmem:[%s4560_s8 + $0x10] sm:$0xff] }
  0xad   : > { %v500_v14 = vadd.f32 1e-05, %v499_v13  ;;  %v875_v13 = vld [vmem:[%s4560_s8 + $0x8] sm:$0xff] }
  0xaf   : > { %3421 = vrsqrt.f32 %v500_v14  ;;  %v874_v14 = vld [vmem:[%s4560_s8] sm:$0xff] }
  0xbc   : > { %v3422_v15 = vpop.eup %3421 }
  0xbd   : > { %v502_v17 = vmul.f32 %v3422_v15, %v490_v0  ;;  %v952_v15 = vld [vmem:[%s4561_s9] sm:$0xff] }
  0xbf   : > { %v510_v18 = vmul.f32 %v3002_v16, %v502_v17 }
  0xc1   : > { %3182 = vmatmul.mubr.msk.f32.vlgmr.msra.gmra.mxu0 %vm494_vm0, %v510_v18  ;;  %3193 = vmatmul.mubr.msk.f32.vlgmr.msra.gmra.mxu1 %vm494_vm0, %v510_v18 }
  0xc2   : > { %3211 = vmatprep.mubr.msk.f32.mxu0 %vm3571_vm1, %v4572_v5  ;;  %3230 = vmatprep.mubr.msk.f32.mxu1 %vm3571_vm1, %v4572_v5 }
  0xc3   : > { %3196 = vmatpush3.msra.mxu0 %v721_v19  ;;  %3215 = vmatpush3.msra.mxu1 %v803_v20  ;;  %v3910_v19 = vsub.s32 4, %v3822_v36 }
  0xc4   : > { %3197 = vmatprep.subr.mxu0 %v4572_v5  ;;  %3216 = vmatprep.subr.mxu1 %v4572_v5 }
  0xc5   : > { %3198 = vmatpush3.msra.mxu0 %v720_v21  ;;  %3217 = vmatpush3.msra.mxu1 %v802_v22 }
  0xc6   : > { %3199 = vmatprep.subr.mxu0 %v4572_v5  ;;  %3218 = vmatprep.subr.mxu1 %v4572_v5 }
  0xc7   : > { %3200 = vmatpush3.msra.mxu0 %v719_v23  ;;  %3219 = vmatpush3.msra.mxu1 %v801_v24  ;;  %v3917_v24 = vsub.s32 5, %v3822_v36 }
  0xc8   : > { %3201 = vmatprep.subr.mxu0 %v4572_v5  ;;  %3220 = vmatprep.subr.mxu1 %v4572_v5 }
  0xc9   : > { %3202 = vmatpush3.msra.mxu0 %v718_v25  ;;  %3221 = vmatpush3.msra.mxu1 %v800_v26  ;;  %v3921_v26 = vsub.s32 6, %v3822_v36 }
  0xca   : > { %3203 = vmatprep.subr.mxu0 %v4572_v5  ;;  %3222 = vmatprep.subr.mxu1 %v4572_v5 }
  0xcb   : > { %3204 = vmatpush3.msra.mxu0 %v717_v27  ;;  %3223 = vmatpush3.msra.mxu1 %v799_v28 }
  0xcc   : > { %3205 = vmatprep.subr.mxu0 %v4572_v5  ;;  %3224 = vmatprep.subr.mxu1 %v4572_v5 }
  0xcd   : > { %3206 = vmatpush3.msra.mxu0 %v716_v29  ;;  %3225 = vmatpush3.msra.mxu1 %v798_v30  ;;  %v3926_v29 = vsub.s32 7, %v3822_v36 }
  0xce   : > { %3207 = vmatprep.subr.mxu0 %v4572_v5  ;;  %3226 = vmatprep.subr.mxu1 %v4572_v5 }
  0xcf   : > { %3208 = vmatpush3.msra.mxu0 %v715_v31  ;;  %3227 = vmatpush3.msra.mxu1 %v797_v32 }
  0xd0   : > { %3209 = vmatprep.subr.mxu0 %v4572_v5  ;;  %3228 = vmatprep.subr.mxu1 %v4572_v5 }
  0xd1   : > { %3210 = vmatpush3.msra.mxu0 %v714_v33  ;;  %3229 = vmatpush3.msra.mxu1 %v796_v34 }
  0xd2   : > { %3233 = vmatprep.subr.mxu0 %v4572_v5  ;;  %3257 = vmatprep.subr.mxu1 %v4572_v5 }
 0x181   : > { %v584_v42 = vpop.f32.mrf.mxu0  ;;  %v3843_v45 = vpop.f32.mrf.mxu1 }
 0x182   : > { %v668_v46 = vrot.slane %v584_v42, 5  ;;  %v679_v47 = vrot.slane %v584_v42, 6  ;;  %v690_v48 = vrot.slane %v584_v42, 7  ;;  %v667_v54 = vmul.f32 %v666_v41, %v584_v42 }
 0x183   : > { %v3183_v50 = vpop.f32.mrf.mxu0  ;;  %v3194_v51 = vpop.f32.mrf.mxu1 }
 0x184   : > { %v672_v52 = vsel %vm669_vm2, %v668_v46, 0.0  ;;  %v683_v53 = vsel %vm680_vm3, %v679_v47, 0.0  ;;  %v694_v57 = vsel %vm691_vm4, %v690_v48, 0.0  ;;  %v1628_v48 = vld [vmem:[%s4565_s13 + $0x38] sm:$0xff]  ;;  %v1626_v50 = vld [vmem:[%s4565_s13 + $0x28] sm:$0xff]  ;;  %v1625_v51 = vld [vmem:[%s4565_s13 + $0x20] sm:$0xff] }
 0x185   : > { %v677_v55 = vmul.f32 %v676_v43, %v672_v52  ;;  %v688_v59 = vmul.f32 %v687_v49, %v683_v53  ;;  %v699_v61 = vmul.f32 %v698_v56, %v694_v57  ;;  %v1627_v49 = vld [vmem:[%s4565_s13 + $0x30] sm:$0xff]  ;;  %v1624_v52 = vld [vmem:[%s4565_s13 + $0x18] sm:$0xff]  ;;  %v3009_v57 = vld [vmem:[%s4562_s10] ss:$0 sm:$0xff] }
 0x186   : > { %v1623_v53 = vld [vmem:[%s4565_s13 + $0x10] sm:$0xff] }
 0x187   : > { %v678_v58 = vadd.f32 %v677_v55, %v667_v54  ;;  %v1622_v54 = vld [vmem:[%s4565_s13 + $0x8] sm:$0xff]  ;;  %v1621_v55 = vld [vmem:[%s4565_s13] sm:$0xff] }
 0x189   : > { %v689_v60 = vadd.f32 %v688_v59, %v678_v58 }
 0x18b   : > { %v700_v63 = vadd.f32 %v699_v61, %v689_v60 }
 0x18d   : > { %v708_v0 = vadd.f32 %v3005_v62, %v700_v63 }
 0x18f   : > { %v709_v1 = vmul.f32 0.5, %v708_v0 }
 0x191   : > { %3423 = vtanh.f32 %v709_v1 }
 0x19e   : > { %v3424_v2 = vpop.eup %3423 }
 0x19f   : > { %v711_v3 = vmul.f32 0.5, %v3424_v2 }
 0x1a1   : > { %v712_v4 = vadd.f32 0.5, %v711_v3 }
 0x1a3   : > { %v3857_v6 = vmul.f32 %v712_v4, %v708_v0 }
 0x1a5   : > { %3212 = vmatmul.mubr.msk.f32.vlgmr.msra.gmra.mxu0 %vm722_vm5, %v3857_v6  ;;  %3231 = vmatmul.mubr.msk.f32.vlgmr.msra.gmra.mxu1 %vm722_vm5, %v3857_v6 }
 0x1a6   : > { %3234 = vmatpush3.msra.mxu0 %v881_v7  ;;  %3249 = vmatprep.mubr.msk.f32.mxu0 %vm3571_vm1, %v4572_v5 }
 0x1a7   : > { %3235 = vmatprep.subr.mxu0 %v4572_v5  ;;  %3273 = vmatprep.mubr.msk.f32.mxu1 %vm3571_vm1, %v4572_v5 }
 0x1a8   : > { %3236 = vmatpush3.msra.mxu0 %v880_v8  ;;  %3258 = vmatpush3.msra.mxu1 %v1628_v48 }
 0x1a9   : > { %3237 = vmatprep.subr.mxu0 %v4572_v5  ;;  %3259 = vmatprep.subr.mxu1 %v4572_v5 }
 0x1aa   : > { %3238 = vmatpush3.msra.mxu0 %v879_v9  ;;  %3260 = vmatpush3.msra.mxu1 %v1627_v49 }
 0x1ab   : > { %3239 = vmatprep.subr.mxu0 %v4572_v5  ;;  %3261 = vmatprep.subr.mxu1 %v4572_v5 }
 0x1ac   : > { %3240 = vmatpush3.msra.mxu0 %v878_v10  ;;  %3262 = vmatpush3.msra.mxu1 %v1626_v50  ;;  %v3572_v10 = vmov 1966171168  }
 0x1ad   : > { %3241 = vmatprep.subr.mxu0 %v4572_v5  ;;  %3263 = vmatprep.subr.mxu1 %v4572_v5 }
 0x1ae   : > { %3242 = vmatpush3.msra.mxu0 %v877_v11  ;;  %3264 = vmatpush3.msra.mxu1 %v1625_v51  ;;  %v1054_v11 = vunpack.c.l.s4 %v3572_v10 }
 0x1af   : > { %3243 = vmatprep.subr.mxu0 %v4572_v5  ;;  %3265 = vmatprep.subr.mxu1 %v4572_v5 }
 0x1b0   : > { %3244 = vmatpush3.msra.mxu0 %v876_v12  ;;  %3266 = vmatpush3.msra.mxu1 %v1624_v52 }
 0x1b1   : > { %3245 = vmatprep.subr.mxu0 %v4572_v5  ;;  %3267 = vmatprep.subr.mxu1 %v4572_v5 }
 0x1b2   : > { %3246 = vmatpush3.msra.mxu0 %v875_v13  ;;  %3268 = vmatpush3.msra.mxu1 %v1623_v53 }
 0x1b3   : > { %3247 = vmatprep.subr.mxu0 %v4572_v5  ;;  %3269 = vmatprep.subr.mxu1 %v4572_v5 }
 0x1b4   : > { %3248 = vmatpush3.msra.mxu0 %v874_v14  ;;  %3270 = vmatpush3.msra.mxu1 %v1622_v54 }
 0x1b5   : > { %3250 = vmatmul.mubr.msk.f32.vlgmr.msra.gmra.mxu0 %vm722_vm5, %v3857_v6  ;;  %3252 = vmatprep.subr.mxu0 %v4572_v5 }
 0x1b6   : > { %3253 = vmatpush3.msra.mxu0 %v952_v15  ;;  %3254 = vmatprep.mubr.msk.f32.mxu0 %vm3571_vm1, %v4572_v5  ;;  %v1055_v15 = vunpack.c.0.s8 %v1054_v11 }
 0x1b7   : > { %3276 = vmatprep.subr.mxu0 %v4572_v5  ;;  %3271 = vmatprep.subr.mxu1 %v4572_v5 }
 0x1b8   : > { %3272 = vmatpush3.msra.mxu1 %v1621_v55 }
 0x1b9   : > { %3287 = vmatprep.subr.mxu1 %v4572_v5 }
 0x265   : > { %v792_v16 = vpop.f32.mrf.mxu0  ;;  %v870_v17 = vpop.f32.mrf.mxu1 }
 0x266   : > { %3255 = vmatmul.mubr.msk.f32.vlgmr.msra.gmra.mxu0 %vm960_vm6, %v792_v16  ;;  %v1243_v18 = vrot.slane %v870_v17, %v3831_v39  ;;  %v1254_v22 = vrot.slane %v870_v17, %v3834_v40  ;;  %v1287_v23 = vrot.slane %v870_v17, %v3910_v19  ;;  %v1298_v25 = vrot.slane %v870_v17, %v3917_v24 }
 0x267   : > { %v3213_v20 = vpop.f32.mrf.mxu0  ;;  %v3232_v21 = vpop.f32.mrf.mxu1  ;;  %3284 = vmatprep.mubr.msk.f32.mxu0 %vm3571_vm1, %v4572_v5  ;;  %v1265_v27 = vrot.slane %v870_v17, %v3841_v44  ;;  %v1309_v28 = vrot.slane %v870_v17, %v3921_v26  ;;  %v1320_v31 = vrot.slane %v870_v17, %v3926_v29  ;;  %v1276_v33 = vrot.slane %v870_v17, %v3825_v37 }
 0x268   : > { %1249 = vbcast.lane.b32.xlu1 %v1243_v18, 264  ;;  %1245 = vbcast.lane.b32.xlu0 %v1243_v18, 256 }
 0x26c   : > { %1256 = vbcast.lane.b32.xlu1 %v1254_v22, 256  ;;  %1289 = vbcast.lane.b32.xlu0 %v1287_v23, 256 }
 0x270   : > { %1260 = vbcast.lane.b32.xlu1 %v1254_v22, 264  ;;  %1300 = vbcast.lane.b32.xlu0 %v1298_v25, 256 }
 0x274   : > { %1267 = vbcast.lane.b32.xlu1 %v1265_v27, 256  ;;  %1311 = vbcast.lane.b32.xlu0 %v1309_v28, 256 }
 0x275   : > { %v948_v30 = vpop.f32.mrf.mxu0 }
 0x276   : > { %v1387_v34 = vrot.slane %v948_v30, %v3831_v39  ;;  %v1398_v35 = vrot.slane %v948_v30, %v3834_v40  ;;  %v1409_v38 = vrot.slane %v948_v30, %v3841_v44  ;;  %v1420_v41 = vrot.slane %v948_v30, %v3825_v37 }
 0x277   : > { %v3251_v32 = vpop.f32.mrf.mxu0  ;;  %v1431_v42 = vrot.slane %v948_v30, %v3910_v19  ;;  %v1442_v43 = vrot.slane %v948_v30, %v3917_v24  ;;  %v1453_v46 = vrot.slane %v948_v30, %v3921_v26  ;;  %v1464_v47 = vrot.slane %v948_v30, %v3926_v29 }
 0x278   : > { %1271 = vbcast.lane.b32.xlu1 %v1265_v27, 264  ;;  %1322 = vbcast.lane.b32.xlu0 %v1320_v31, 256 }
 0x27c   : > { %1278 = vbcast.lane.b32.xlu1 %v1276_v33, 256  ;;  %1389 = vbcast.lane.b32.xlu0 %v1387_v34, 256 }
 0x280   : > { %1282 = vbcast.lane.b32.xlu1 %v1276_v33, 264  ;;  %1400 = vbcast.lane.b32.xlu0 %v1398_v35, 256 }
 0x284   : > { %1293 = vbcast.lane.b32.xlu1 %v1287_v23, 264  ;;  %1411 = vbcast.lane.b32.xlu0 %v1409_v38, 256  ;;  %v3994_v23 = vsub.s32 %v1055_v15, %v3822_v36  ;;  %v3053_v36 = vld [vmem:[%s4560_s8 + $0x78] sm:$0xff] }
 0x288   : > { %1304 = vbcast.lane.b32.xlu1 %v1298_v25, 264  ;;  %1422 = vbcast.lane.b32.xlu0 %v1420_v41, 256 }
 0x28c   : > { %1315 = vbcast.lane.b32.xlu1 %v1309_v28, 264  ;;  %1433 = vbcast.lane.b32.xlu0 %v1431_v42, 256 }
 0x290   : > { %1326 = vbcast.lane.b32.xlu1 %v1320_v31, 264  ;;  %1444 = vbcast.lane.b32.xlu0 %v1442_v43, 256 }
 0x294   : > { %1393 = vbcast.lane.b32.xlu1 %v1387_v34, 264  ;;  %1455 = vbcast.lane.b32.xlu0 %v1453_v46, 256 }
 0x298   : > { %1404 = vbcast.lane.b32.xlu1 %v1398_v35, 264  ;;  %1466 = vbcast.lane.b32.xlu0 %v1464_v47, 256 }
 0x29c   : > { %1415 = vbcast.lane.b32.xlu1 %v1409_v38, 264  ;;  %v4006_v38 = vld [vmem:[%s4563_s11] sm:$0xff] }
 0x2a0   : > { %1426 = vbcast.lane.b32.xlu1 %v1420_v41, 264 }
 0x2a4   : > { %1437 = vbcast.lane.b32.xlu1 %v1431_v42, 264 }
 0x2a8   : > { %1448 = vbcast.lane.b32.xlu1 %v1442_v43, 264 }
 0x2ac   : > { %1459 = vbcast.lane.b32.xlu1 %v1453_v46, 264 }
 0x2b0   : > { %1470 = vbcast.lane.b32.xlu1 %v1464_v47, 264  ;;  %v4016_v47 = vld [vmem:[%s4563_s11 + $0x8] sm:$0xff] }
 0x2da   : > { %v3970_v56 = vpop.permute.xlu1 %1249  ;;  %v3985_v12 = vpop.permute.xlu0 %1245 }
 0x2de   : > { %v3975_v60 = vpop.permute.xlu1 %1256  ;;  %v3989_v18 = vpop.permute.xlu0 %1289 }
 0x2e2   : > { %v3977_v1 = vpop.permute.xlu1 %1260  ;;  %v3996_v30 = vpop.permute.xlu0 %1300 }
 0x2e6   : > { %v3979_v2 = vpop.permute.xlu1 %1267  ;;  %v4009_v43 = vpop.permute.xlu0 %1311 }
 0x2ea   : > { %v3981_v3 = vpop.permute.xlu1 %1271 }
 0x2ee   : > { %v3983_v8 = vpop.permute.xlu1 %1278 }
 0x2f2   : > { %v3987_v13 = vpop.permute.xlu1 %1282 }
 0x2f6   : > { %v3991_v20 = vpop.permute.xlu1 %1293 }
 0x2fa   : > { %v3998_v31 = vpop.permute.xlu1 %1304 }
 0x2fe   : > { %v4011_v46 = vpop.permute.xlu1 %1315 }
 0x326   : > { %v1030_v58 = vpop.f32.mrf.mxu0 }
 0x327   : > { %v1031_v59 = vadd.f32 %v3009_v57, %v1030_v58  ;;  %v4025_v58 = vpop.permute.xlu0 %1322 }
 0x328   : > { %v3256_v61 = vpop.f32.mrf.mxu0 }
 0x329   : > { %v1035_v62 = vand.u32 2147483647, %v1031_v59  ;;  %v1034_v25 = vmax.f32 %v1031_v59, 0.0  ;;  %v4027_v59 = vpop.permute.xlu1 %1326 }
 0x32b   : > { %v1036_v63 = vsub.f32 0.0, %v1035_v62 }
 0x32d   : > { %v1037_v0 = vmul.f32 1.442695, %v1036_v63 }
 0x32f   : > { %3425 = vpow2.f32 %v1037_v0 }
 0x33c   : > { %v3426_v4 = vpop.eup %3425 }
 0x33d   : > { %v1039_v7 = vadd.f32 1.0, %v3426_v4  ;;  %v1042_v9 = vmul.f32 -0.5, %v3426_v4  ;;  %v1045_v16 = vand.u32 2147483647, %v3426_v4 }
 0x33f   : > { %3427 = vlog2.f32 %v1039_v7  ;;  %v1043_v14 = vadd.f32 1.0, %v1042_v9  ;;  %vm1046_vm7 = vcmp.lt.f32.partialorder %v1045_v16, 0.0004427343 }
 0x341   : > { %v1044_v22 = vmul.f32 %v3426_v4, %v1043_v14 }
 0x34c   : > { %v3428_v17 = vpop.eup %3427 }
 0x34d   : > { %v1041_v21 = vmul.f32 0.6931472, %v3428_v17 }
 0x34f   : > { %v1047_v27 = vsel %vm1046_vm7, %v1044_v22, %v1041_v21  ;;  %v4036_v21 = vpop.permute.xlu0 %1389  ;;  %v4038_v22 = vpop.permute.xlu1 %1393 }
 0x350   : > { %v1048_v28 = vadd.f32 %v1047_v27, %v1034_v25 }
 0x352   : > { %v1059_v32 = vrot.slane %v1048_v28, %v3994_v23  ;;  %v1052_v41 = vcombine.high %v1048_v28, %v1048_v28  ;;  %v1189_v62 = vmul.f32 %v1048_v28, %v3857_v6 }
 0x354   : > { %v1067_v33 = vcombine.high %v1059_v32, %v1059_v32  ;;  %v1075_v34 = vrot.slane %v1059_v32, %v3994_v23  ;;  %v1066_v51 = vrot.slane %v1052_v41, %v3994_v23  ;;  %v1198_v15 = vrot.slane %v1189_v62, %v3994_v23 }
 0x356   : > { %v1089_v35 = vrot.slane %v1067_v33, %v3994_v23  ;;  %v1104_v42 = vrot.slane %v1075_v34, %v3831_v39  ;;  %v1097_v48 = vcombine.high %v1075_v34, %v1075_v34  ;;  %v1068_v63 = vcombine.high %v1066_v51, %v1066_v51 }
 0x357   : > { %v1082_v0 = vrot.slane %v1066_v51, %v3994_v23  ;;  %v1191_v34 = vcombine.high %v1189_v62, %v1189_v62  ;;  %v1214_v41 = vrot.slane %v1198_v15, %v3994_v23 }
 0x358   : > { %v1108_v49 = vrot.slane %v1089_v35, %v3831_v39  ;;  %v1141_v50 = vmul.f32 %v1104_v42, %v4006_v38  ;;  %v1142_v52 = vmul.f32 %v1104_v42, %v4016_v47  ;;  %v1099_v53 = vcombine.high %v1089_v35, %v1089_v35 }
 0x359   : > { %v1112_v54 = vrot.slane %v1097_v48, %v3831_v39  ;;  %v1096_v16 = vrot.slane %v1068_v63, %v3994_v23  ;;  %v1098_v17 = vcombine.high %v1082_v0, %v1082_v0  ;;  %v1120_v25 = vrot.slane %v1082_v0, %v3831_v39 }
 0x35a   : > { %v1143_v55 = vmul.f32 %v1108_v49, %v4006_v38  ;;  %v1144_v57 = vmul.f32 %v1108_v49, %v4016_v47  ;;  %v1157_v61 = vmul.f32 1.442695, %v1141_v50  ;;  %v1159_v4 = vmul.f32 1.442695, %v1142_v52 }
 0x35b   : > { %v1116_v7 = vrot.slane %v1099_v53, %v3831_v39  ;;  %v1145_v9 = vmul.f32 %v1112_v54, %v4006_v38  ;;  %v1146_v11 = vmul.f32 %v1112_v54, %v4016_v47  ;;  %v1206_v35 = vcombine.high %v1198_v15, %v1198_v15 }
 0x35c   : > { %3429 = vpow2.f32 %v1157_v61  ;;  %v1161_v10 = vmul.f32 1.442695, %v1143_v55  ;;  %v1163_v14 = vmul.f32 1.442695, %v1144_v57  ;;  %v1100_v42 = vcombine.high %v1096_v16, %v1096_v16  ;;  %v1401_v55 = vpop.permute.xlu0 %1400  ;;  %v1405_v57 = vpop.permute.xlu1 %1404 }
 0x35d   : > { %3431 = vpow2.f32 %v1159_v4  ;;  %v1147_v27 = vmul.f32 %v1116_v7, %v4006_v38  ;;  %v1165_v28 = vmul.f32 1.442695, %v1145_v9  ;;  %v1148_v32 = vmul.f32 %v1116_v7, %v4016_v47 }
 0x35e   : > { %3433 = vpow2.f32 %v1161_v10  ;;  %v1167_v33 = vmul.f32 1.442695, %v1146_v11  ;;  %v1124_v48 = vrot.slane %v1096_v16, %v3831_v39  ;;  %v1128_v49 = vrot.slane %v1098_v17, %v3831_v39 }
 0x35f   : > { %3435 = vpow2.f32 %v1163_v14  ;;  %v1149_v50 = vmul.f32 %v1120_v25, %v4006_v38  ;;  %v1169_v51 = vmul.f32 1.442695, %v1147_v27  ;;  %v1150_v52 = vmul.f32 %v1120_v25, %v4016_v47 }
 0x360   : > { %3437 = vpow2.f32 %v1165_v28  ;;  %v1171_v53 = vmul.f32 1.442695, %v1148_v32  ;;  %v1205_v54 = vrot.slane %v1191_v34, %v3994_v23  ;;  %v1228_v61 = vrot.slane %v1206_v35, %v3994_v23 }
 0x361   : > { %3439 = vpow2.f32 %v1167_v33  ;;  %v1331_v62 = vrot.slane %v1214_v41, %v3831_v39  ;;  %v1615_v63 = vmul.f32 0.5, %v3843_v45  ;;  %v1132_v0 = vrot.slane %v1100_v42, %v3831_v39 }
 0x362   : > { %v1151_v4 = vmul.f32 %v1124_v48, %v4006_v38  ;;  %v1152_v7 = vmul.f32 %v1124_v48, %v4016_v47  ;;  %v1153_v9 = vmul.f32 %v1128_v49, %v4006_v38  ;;  %3441 = vpow2.f32 %v1169_v51  ;;  %v1412_v48 = vpop.permute.xlu0 %1411 }
 0x363   : > { %v1173_v10 = vmul.f32 1.442695, %v1149_v50  ;;  %v1154_v14 = vmul.f32 %v1128_v49, %v4016_v47  ;;  %3443 = vpow2.f32 %v1171_v53  ;;  %v1175_v15 = vmul.f32 1.442695, %v1150_v52  ;;  %v1416_v50 = vpop.permute.xlu1 %1415 }
 0x364   : > { %v1207_v16 = vcombine.high %v1205_v54, %v1205_v54  ;;  %v1236_v25 = vcombine.high %v1214_v41, %v1214_v41  ;;  %v1335_v27 = vrot.slane %v1228_v61, %v3831_v39  ;;  %v1368_v28 = vmul.f32 %v1331_v62, %v3985_v12 }
 0x365   : > { %v1155_v33 = vmul.f32 %v1132_v0, %v4006_v38  ;;  %v1156_v34 = vmul.f32 %v1132_v0, %v4016_v47  ;;  %v1369_v35 = vmul.f32 %v1331_v62, %v3970_v56  ;;  %3445 = vpow2.f32 %v1173_v10 }
 0x366   : > { %v1177_v49 = vmul.f32 1.442695, %v1151_v4  ;;  %v1238_v51 = vcombine.high %v1228_v61, %v1228_v61  ;;  %3447 = vpow2.f32 %v1175_v15  ;;  %v1179_v41 = vmul.f32 1.442695, %v1152_v7 }
 0x367   : > { %v4063_v5 = vrot.slane %v1205_v54, %v3994_v23  ;;  %v4066_v38 = vrot.slane %v1207_v16, %v3994_v23  ;;  %v1339_v56 = vrot.slane %v1236_v25, %v3831_v39  ;;  %v1370_v47 = vmul.f32 %v1335_v27, %v3975_v60  ;;  %v1423_v25 = vpop.permute.xlu0 %1422 }
 0x368   : > { %3449 = vtanh.f32 %v1615_v63  ;;  %v1181_v0 = vmul.f32 1.442695, %v1153_v9  ;;  %v1371_v61 = vmul.f32 %v1335_v27, %v3977_v1  ;;  %v1183_v7 = vmul.f32 1.442695, %v1154_v14 }
 0x369   : > { %v3430_v11 = vpop.eup %3429  ;;  %3451 = vpow2.f32 %v1177_v49  ;;  %v1343_v54 = vrot.slane %v1238_v51, %v3831_v39  ;;  %v1187_v16 = vmul.f32 1.442695, %v1156_v34  ;;  %v1237_v60 = vcombine.high %v4063_v5, %v4063_v5 }
 0x36a   : > { %v3432_v17 = vpop.eup %3431  ;;  %v1472_v32 = vmul.f32 0.0, %v3430_v11  ;;  %3453 = vpow2.f32 %v1179_v41  ;;  %v1239_v1 = vcombine.high %v4066_v38, %v4066_v38  ;;  %v1372_v63 = vmul.f32 %v1339_v56, %v3979_v2 }
 0x36b   : > { %v1473_v42 = vmul.f32 0.0, %v3432_v17  ;;  %v3434_v53 = vpop.eup %3433  ;;  %v1185_v17 = vmul.f32 1.442695, %v1155_v33  ;;  %v1373_v14 = vmul.f32 %v1339_v56, %v3981_v3  ;;  %3455 = vpow2.f32 %v1181_v0  ;;  %v1434_v0 = vpop.permute.xlu0 %1433 }
 0x36c   : > { %v1474_v52 = vadd.f32 %v1472_v32, %v1368_v28  ;;  %v3436_v11 = vpop.eup %3435  ;;  %v1347_v33 = vrot.slane %v4063_v5, %v3831_v39  ;;  %v1374_v34 = vmul.f32 %v1343_v54, %v3983_v8  ;;  %3457 = vpow2.f32 %v1183_v7 }
 0x36d   : > { %v1475_v12 = vadd.f32 %v1473_v42, %v1369_v35  ;;  %v3438_v15 = vpop.eup %3437  ;;  %v1427_v35 = vpop.permute.xlu1 %1426  ;;  %3459 = vpow2.f32 %v1185_v17  ;;  %v1375_v3 = vmul.f32 %v1343_v54, %v3987_v13 }
 0x36e   : > { %v1487_v62 = vmul.f32 %v3434_v53, %v1474_v52  ;;  %v3440_v32 = vpop.eup %3439  ;;  %v1476_v41 = vmul.f32 %v1474_v52, %v4036_v21  ;;  %3461 = vpow2.f32 %v1187_v16  ;;  %v1351_v21 = vrot.slane %v4066_v38, %v3831_v39 }
 0x36f   : > { %v1488_v4 = vmul.f32 %v3436_v11, %v1475_v12  ;;  %v3442_v53 = vpop.eup %3441  ;;  %v1477_v11 = vmul.f32 %v1475_v12, %v4038_v22  ;;  %v1377_v16 = vmul.f32 %v1347_v33, %v3991_v20 }
 0x370   : > { %v1489_v10 = vadd.f32 %v1487_v62, %v1370_v47  ;;  %v3444_v47 = vpop.eup %3443  ;;  %v1478_v13 = vsel %vm722_vm5, %v1476_v41, 0.0 }
 0x371   : > { %v1490_v28 = vadd.f32 %v1488_v4, %v1371_v61  ;;  %v1438_v61 = vpop.permute.xlu1 %1437 }
 0x372   : > { %v1502_v9 = vmul.f32 %v3438_v15, %v1489_v10  ;;  %v1491_v27 = vmul.f32 %v1489_v10, %v1401_v55  ;;  %v3446_v12 = vpop.eup %3445 }
 0x373   : > { %v1492_v42 = vmul.f32 %v1490_v28, %v1405_v57  ;;  %v1503_v49 = vmul.f32 %v3440_v32, %v1490_v28  ;;  %v3448_v54 = vpop.eup %3447 }
 0x374   : > { %v1504_v51 = vadd.f32 %v1502_v9, %v1372_v63  ;;  %v1493_v56 = vsel %vm722_vm5, %v1491_v27, 0.0  ;;  %v1355_v9 = vrot.slane %v1237_v60, %v3831_v39 }
 0x375   : > { %v1505_v2 = vadd.f32 %v1503_v49, %v1373_v14  ;;  %v1494_v5 = vsel %vm722_vm5, %v1492_v42, 0.0  ;;  %v4094_v63 = vpop.eup %3449  ;;  %v1359_v14 = vrot.slane %v1239_v1, %v3831_v39 }
 0x376   : > { %v1506_v55 = vmul.f32 %v1504_v51, %v1412_v48  ;;  %v1517_v57 = vmul.f32 %v3442_v53, %v1504_v51  ;;  %v1479_v48 = vsel %vm722_vm5, %v1477_v11, 0.0  ;;  %v1495_v10 = vadd.f32 %v1494_v5, %v1493_v56  ;;  %v3452_v49 = vpop.eup %3451 }
 0x377   : > { %v1507_v62 = vmul.f32 %v1505_v2, %v1416_v50  ;;  %v1518_v8 = vmul.f32 %v3444_v47, %v1505_v2  ;;  %v1376_v50 = vmul.f32 %v1347_v33, %v3989_v18  ;;  %v1480_v27 = vadd.f32 %v1479_v48, %v1478_v13  ;;  %v3454_v20 = vpop.eup %3453  ;;  %v1449_v33 = vpop.permute.xlu1 %1448 }
 0x378   : > { %v1508_v22 = vsel %vm722_vm5, %v1506_v55, 0.0  ;;  %v1519_v52 = vadd.f32 %v1517_v57, %v1374_v34  ;;  %v1378_v18 = vmul.f32 %v1351_v21, %v3996_v30  ;;  %v1379_v53 = vmul.f32 %v1351_v21, %v3998_v31  ;;  %v3456_v5 = vpop.eup %3455 }
 0x379   : > { %v1509_v4 = vsel %vm722_vm5, %v1507_v62, 0.0  ;;  %v1520_v7 = vadd.f32 %v1518_v8, %v1375_v3  ;;  %v1496_v41 = vrot.slane %v1495_v10, 4  ;;  %v1380_v55 = vmul.f32 %v1355_v9, %v4009_v43  ;;  %v3458_v21 = vpop.eup %3457 }
 0x37a   : > { %v1510_v15 = vadd.f32 %v1509_v4, %v1508_v22  ;;  %v1521_v17 = vmul.f32 %v1519_v52, %v1423_v25  ;;  %v1532_v28 = vmul.f32 %v3446_v12, %v1519_v52  ;;  %v1381_v30 = vmul.f32 %v1355_v9, %v4011_v46  ;;  %v3460_v13 = vpop.eup %3459 }
 0x37b   : > { %v1522_v38 = vmul.f32 %v1520_v7, %v1427_v35  ;;  %v1533_v32 = vmul.f32 %v3448_v54, %v1520_v7  ;;  %v1445_v35 = vpop.permute.xlu0 %1444  ;;  %v1481_v57 = vrot.slane %v1480_v27, 4  ;;  %v1382_v52 = vmul.f32 %v1359_v14, %v4025_v58  ;;  %v1460_v54 = vpop.permute.xlu1 %1459 }
 0x37c   : > { %v1523_v42 = vsel %vm722_vm5, %v1521_v17, 0.0  ;;  %v1534_v25 = vadd.f32 %v1532_v28, %v1376_v50  ;;  %v1511_v11 = vrot.slane %v1510_v15, 4  ;;  %v1383_v50 = vmul.f32 %v1359_v14, %v4027_v59  ;;  %v3462_v28 = vpop.eup %3461 }
 0x37d   : > { %v1524_v34 = vsel %vm722_vm5, %v1522_v38, 0.0  ;;  %v1535_v51 = vadd.f32 %v1533_v32, %v1377_v16  ;;  %v1482_v17 = vadd.f32 %v1481_v57, %v1480_v27 }
 0x37e   : > { %v1525_v60 = vadd.f32 %v1524_v34, %v1523_v42  ;;  %v1536_v2 = vmul.f32 %v1534_v25, %v1434_v0  ;;  %v1547_v47 = vmul.f32 %v3452_v49, %v1534_v25  ;;  %v1497_v0 = vadd.f32 %v1496_v41, %v1495_v10 }
 0x37f   : > { %v1537_v1 = vmul.f32 %v1535_v51, %v1438_v61  ;;  %v1548_v3 = vmul.f32 %v3454_v20, %v1535_v51  ;;  %v1512_v61 = vadd.f32 %v1511_v11, %v1510_v15  ;;  %v1456_v7 = vpop.permute.xlu0 %1455 }
 0x380   : > { %v1526_v56 = vrot.slane %v1525_v60, 4  ;;  %v1538_v62 = vsel %vm722_vm5, %v1536_v2, 0.0  ;;  %v1549_v22 = vadd.f32 %v1547_v47, %v1378_v18  ;;  %v1498_v9 = vrot.slane %v1497_v0, 2  ;;  %v1471_v2 = vpop.permute.xlu1 %1470 }
 0x381   : > { %v1539_v8 = vsel %vm722_vm5, %v1537_v1, 0.0  ;;  %v1550_v31 = vadd.f32 %v1548_v3, %v1379_v53  ;;  %v1513_v42 = vrot.slane %v1512_v61, 2 }
 0x382   : > { %v1540_v12 = vadd.f32 %v1539_v8, %v1538_v62  ;;  %v1551_v48 = vmul.f32 %v1549_v22, %v1445_v35  ;;  %v1562_v4 = vmul.f32 %v3456_v5, %v1549_v22  ;;  %v1527_v16 = vadd.f32 %v1526_v56, %v1525_v60 }
 0x383   : > { %v1552_v43 = vmul.f32 %v1550_v31, %v1449_v33  ;;  %v1563_v46 = vmul.f32 %v3458_v21, %v1550_v31  ;;  %v1483_v35 = vrot.slane %v1482_v17, 2  ;;  %v1467_v60 = vpop.permute.xlu0 %1466  ;;  %v1499_v1 = vadd.f32 %v1498_v9, %v1497_v0 }
 0x384   : > { %v1541_v38 = vrot.slane %v1540_v12, 4  ;;  %v1553_v32 = vsel %vm722_vm5, %v1551_v48, 0.0  ;;  %v1564_v10 = vadd.f32 %v1562_v4, %v1380_v55  ;;  %v1528_v59 = vrot.slane %v1527_v16, 2 }
 0x385   : > { %v1554_v58 = vsel %vm722_vm5, %v1552_v43, 0.0  ;;  %v1565_v15 = vadd.f32 %v1563_v46, %v1381_v30  ;;  %v1514_v55 = vadd.f32 %v1513_v42, %v1512_v61  ;;  %v1484_v56 = vadd.f32 %v1483_v35, %v1482_v17 }
 0x386   : > { %v1542_v49 = vadd.f32 %v1541_v38, %v1540_v12  ;;  %v1555_v18 = vadd.f32 %v1554_v58, %v1553_v32  ;;  %v1566_v34 = vmul.f32 %v1564_v10, %v1456_v7  ;;  %v1577_v51 = vmul.f32 %v3460_v13, %v1564_v10 }
 0x387   : > { %v1567_v25 = vmul.f32 %v1565_v15, %v1460_v54  ;;  %v1578_v20 = vmul.f32 %v3462_v28, %v1565_v15  ;;  %v1529_v5 = vadd.f32 %v1528_v59, %v1527_v16  ;;  %v1500_v12 = vrot.slane %v1499_v1, 1 }
 0x388   : > { %v1543_v14 = vrot.slane %v1542_v49, 2  ;;  %v1556_v27 = vrot.slane %v1555_v18, 4  ;;  %v1568_v33 = vsel %vm722_vm5, %v1566_v34, 0.0  ;;  %v1579_v41 = vadd.f32 %v1577_v51, %v1382_v52 }
 0x389   : > { %v1569_v53 = vsel %vm722_vm5, %v1567_v25, 0.0  ;;  %v1580_v11 = vadd.f32 %v1578_v20, %v1383_v50  ;;  %v1515_v43 = vrot.slane %v1514_v55, 1  ;;  %v1485_v0 = vrot.slane %v1484_v56, 1 }
 0x38a   : > { %v1557_v47 = vadd.f32 %v1556_v27, %v1555_v18  ;;  %v1570_v3 = vadd.f32 %v1569_v53, %v1568_v33  ;;  %v1581_v30 = vmul.f32 %v1579_v41, %v1467_v60  ;;  %v1544_v22 = vadd.f32 %v1543_v14, %v1542_v49 }
 0x38b   : > { %v1582_v57 = vmul.f32 %v1580_v11, %v1471_v2  ;;  %v1530_v4 = vrot.slane %v1529_v5, 1  ;;  %v1501_v54 = vadd.f32 %v1500_v12, %v1499_v1  ;;  %v1516_v38 = vadd.f32 %v1515_v43, %v1514_v55  ;;  %v3014_v43 = vld [vmem:[%s4583_s1 + $0x1] ss:$0 sm:$0xff]  ;;  %s3508_s1 = scalar_lea.vmem %s2938_s26, 128 }
 0x38c   : > { %v1558_v62 = vrot.slane %v1557_v47, 2  ;;  %v1571_v8 = vrot.slane %v1570_v3, 4  ;;  %v1583_v31 = vsel %vm722_vm5, %v1581_v30, 0.0  ;;  %v1545_v7 = vrot.slane %v1544_v22, 1  ;;  %p3509_p11 = scmp.ne.s32.totalorder %s2938_s26, %s3508_s1  ;;  %p3516_p1 = scmp.lt.s32.totalorder %s3514_s22, %s3508_s1 }
 0x38d   : > { %v1584_v21 = vsel %vm722_vm5, %v1582_v57, 0.0  ;;  %v1486_v28 = vadd.f32 %v1485_v0, %v1484_v56  ;;  %v1531_v32 = vadd.f32 %v1530_v4, %v1529_v5  ;;  %v1617_v15 = vmul.f32 0.5, %v4094_v63  ;;  %v3011_v63 = vld [vmem:[%s4564_s12] ss:$0 sm:$0xff]  ;;  %v3023_v56 = vld [vmem:[%s4555_s3 + $0x38] sm:$0xff]  ;;  %v3017_v5 = vld [vmem:[%s4554_s2 + $0x30] sm:$0xff] }
 0x38e   : > { %v1559_v52 = vadd.f32 %v1558_v62, %v1557_v47  ;;  %v1572_v13 = vadd.f32 %v1571_v8, %v1570_v3  ;;  %v1585_v48 = vadd.f32 %v1584_v21, %v1583_v31  ;;  %v1546_v9 = vadd.f32 %v1545_v7, %v1544_v22  ;;  %v3507_v3 = vld [vmem:[%s3707_s25] sm:$0xff]  ;;  %v3022_v62 = vld [vmem:[%s4555_s3 + $0x30] sm:$0xff]  ;;  %v3016_v8 = vld [vmem:[%s4554_s2 + $0x28] sm:$0xff]  ;;  %s2935_s25 = scalar_lea.hbm %s4567_s15, %s3074_s24  ;;  %p3510_p12 = pnand %p3509_p11, %p3692_p5 }
 0x38f   : > { %v1593_v18 = vsel %vm1592_vm8, %v1486_v28, %v1501_v54  ;;  %v1618_v35 = vadd.f32 0.5, %v1617_v15  ;;  %v1613_v53 = vmul.f32 %v3011_v63, %v3857_v6  ;;  %v4584_v1 = vmov 0.0   ;;  %v3021_v22 = vld [vmem:[%s4555_s3 + $0x28] sm:$0xff]  ;;  %v3015_v31 = vld [vmem:[%s4554_s2 + $0x20] sm:$0xff]  ;;  %v3034_v7 = vld [vmem:[%s4558_s6 + $0x70] sm:$0xff]  ;;  %p3517_p2 = por %p3516_p1, %p3515_p0 }
 0x390   : > { %v1573_v46 = vrot.slane %v1572_v13, 2  ;;  %v1586_v61 = vrot.slane %v1585_v48, 4  ;;  %v1560_v50 = vrot.slane %v1559_v52, 1  ;;  %v1595_v25 = vsel %vm1594_vm9, %v1593_v18, %v1516_v38  ;;  %v3020_v21 = vld [vmem:[%s4555_s3 + $0x20] sm:$0xff]  ;;  %v3043_v54 = vld [vmem:[%s4559_s7 + $0x70] sm:$0xff]  ;;  %v3031_v28 = vld [vmem:[%s4558_s6 + $0x58] sm:$0xff]  ;;  %p3511_p13 = pneg %p3510_p12 }
 0x391   : > { %v1597_v20 = vsel %vm1596_vm10, %v1595_v25, %v1531_v32  ;;  %v1619_v11 = vmul.f32 %v1618_v35, %v3843_v45  ;;  %v3018_v45 = vld [vmem:[%s4554_s2 + $0x38] sm:$0xff]  ;;  %v3041_v38 = vld [vmem:[%s4559_s7 + $0x60] sm:$0xff]  ;;  %v3029_v15 = vld [vmem:[%s4558_s6 + $0x48] sm:$0xff] }
 0x392   : > { %v1574_v17 = vadd.f32 %v1573_v46, %v1572_v13  ;;  %v1587_v16 = vadd.f32 %v1586_v61, %v1585_v48  ;;  %v1561_v42 = vadd.f32 %v1560_v50, %v1559_v52  ;;  %v1599_v59 = vsel %vm1598_vm11, %v1597_v20, %v1546_v9  ;;  %3277 = vmatpush3.msra.mxu0 %v3018_v45  ;;  %v3035_v46 = vld [vmem:[%s4558_s6 + $0x78] sm:$0xff]  ;;  %v3033_v50 = vld [vmem:[%s4558_s6 + $0x68] sm:$0xff]  ;;  %v3025_v18 = vld [vmem:[%s4556_s4 + $0x4] sm:$0xf]  ;;  %p3518_p3 = pnand %p3517_p2, %p3511_p13 }
 0x393   : > { %3278 = vmatprep.subr.mxu0 %v4584_v1  ;;  %v3044_v61 = vld [vmem:[%s4559_s7 + $0x78] sm:$0xff]  ;;  %v3038_v9 = vld [vmem:[%s4559_s7 + $0x48] sm:$0xff]  ;;  %v1878_v25 = vrot.slane %v3025_v18, %v3825_v37  ;;  %v3027_v45 = vld [vmem:[%s4557_s5 + $0x1] ss:$0 sm:$0xff] }
 0x394   : > { %v1575_v58 = vrot.slane %v1574_v17, 1  ;;  %v1588_v10 = vrot.slane %v1587_v16, 2  ;;  %v1601_v27 = vsel %vm1600_vm12, %v1599_v59, %v1561_v42  ;;  %3279 = vmatpush3.msra.mxu0 %v3017_v5  ;;  %v3040_v32 = vld [vmem:[%s4559_s7 + $0x58] sm:$0xff]  ;;  %v3028_v42 = vld [vmem:[%s4558_s6 + $0x40] sm:$0xff] }
 0x395   : > { %3280 = vmatprep.subr.mxu0 %v4584_v1 }
 0x396   : > { %v1589_v49 = vadd.f32 %v1588_v10, %v1587_v16  ;;  %v1576_v34 = vadd.f32 %v1575_v58, %v1574_v17  ;;  %3281 = vmatpush3.msra.mxu0 %v3016_v8  ;;  %v3042_v17 = vld [vmem:[%s4559_s7 + $0x68] sm:$0xff]  ;;  %v3032_v16 = vld [vmem:[%s4558_s6 + $0x60] sm:$0xff]  ;;  %v3030_v58 = vld [vmem:[%s4558_s6 + $0x50] sm:$0xff] }
 0x397   : > { %3282 = vmatprep.subr.mxu0 %v4584_v1  ;;  %v3039_v10 = vld [vmem:[%s4559_s7 + $0x50] sm:$0xff] }
 0x398   : > { %v1590_v51 = vrot.slane %v1589_v49, 1  ;;  %v1603_v33 = vsel %vm1602_vm13, %v1601_v27, %v1576_v34  ;;  %3283 = vmatpush3.msra.mxu0 %v3015_v31 }
 0x399   : > { %3298 = vmatprep.subr.mxu0 %v4584_v1 }
 0x39a   : > { %v1591_v14 = vadd.f32 %v1590_v51, %v1589_v49  ;;  %v3037_v49 = vld [vmem:[%s4559_s7 + $0x40] sm:$0xff]  ;;  %v1885_v51 = vrot.slane %v3025_v18, %v3831_v39 }
 0x39c   : > { %v1605_v41 = vsel %vm1604_vm14, %v1603_v33, %v1591_v14  ;;  %v1893_v14 = vrot.slane %v3025_v18, %v3834_v40 }
 0x39d   : > { %v1614_v60 = vadd.f32 %v1613_v53, %v1605_v41 }
 0x39f   : > { %v1620_v2 = vmul.f32 %v1619_v11, %v1614_v60 }
 0x3a1   : > { %3274 = vmatmul.mubr.msk.f32.vlgmr.msra.gmra.mxu1 %vm722_vm5, %v1620_v2  ;;  %v1901_v2 = vrot.slane %v3025_v18, %v3841_v44 }
 0x3a2   : > { %3295 = vmatprep.mubr.msk.f32.mxu1 %vm3571_vm1, %v4584_v1  ;;  %3288 = vmatpush3.msra.mxu1 %v3023_v56 }
 0x3a3   : > { %3289 = vmatprep.subr.mxu1 %v4584_v1 }
 0x3a4   : > { %3290 = vmatpush3.msra.mxu1 %v3022_v62 }
 0x3a5   : > { %3291 = vmatprep.subr.mxu1 %v4584_v1 }
 0x3a6   : > { %3292 = vmatpush3.msra.mxu1 %v3021_v22 }
 0x3a7   : > { %3293 = vmatprep.subr.mxu1 %v4584_v1 }
 0x3a8   : > { %3294 = vmatpush3.msra.mxu1 %v3020_v21 }
 0x3a9   : > { %3317 = vmatprep.subr.mxu1 %v4584_v1 }
 0x461   : > { %v1698_v47 = vpop.f32.mrf.mxu1 }
 0x462   : > { %v4131_v55 = vadd.f32 %v3507_v3, %v1698_v47 }
 0x463   : > { %v3275_v30 = vpop.f32.mrf.mxu1 }
 0x464   : > { %v1703_v57 = vmul.f32 %v4131_v55, %v4131_v55 }
 0x466   : > { %v1704_v6 = vsel %vm494_vm0, %v1703_v57, 0.0 }
 0x467   : > { %1705 = vadd.xlane.f32.xlu0 %v1704_v6 }
 0x4f0   : > { %v1706_v12 = vpop.xlane.xlu0 %1705 }
 0x4f1   : > { %v1707_v52 = vmul.f32 0.03125, %v1706_v12  ;;  %v3055_v12 = vld [vmem:[%s4561_s9 + $0x8] sm:$0xff] }
 0x4f3   : > { %v1708_v13 = vadd.f32 1e-05, %v1707_v52  ;;  %v3052_v52 = vld [vmem:[%s4560_s8 + $0x70] sm:$0xff] }
 0x4f5   : > { %3463 = vrsqrt.f32 %v1708_v13  ;;  %v3051_v13 = vld [vmem:[%s4560_s8 + $0x68] sm:$0xff] }
 0x502   : > { %v3464_v48 = vpop.eup %3463 }
 0x503   : > { %v1710_v0 = vmul.f32 %v3464_v48, %v4131_v55  ;;  %v3050_v48 = vld [vmem:[%s4560_s8 + $0x60] sm:$0xff] }
 0x505   : > { %v1719_v4 = vmul.f32 %v3014_v43, %v1710_v0  ;;  %v3049_v43 = vld [vmem:[%s4560_s8 + $0x58] sm:$0xff]  ;;  %v3048_v0 = vld [vmem:[%s4560_s8 + $0x50] sm:$0xff] }
 0x507   : > { %3285 = vmatmul.mubr.msk.f32.vlgmr.msra.gmra.mxu0 %vm494_vm0, %v1719_v4  ;;  %3296 = vmatmul.mubr.msk.f32.vlgmr.msra.gmra.mxu1 %vm494_vm0, %v1719_v4  ;;  %v3047_v4 = vld [vmem:[%s4560_s8 + $0x48] sm:$0xff] }
 0x508   : > { %3314 = vmatprep.mubr.msk.f32.mxu0 %vm3571_vm1, %v4584_v1  ;;  %3333 = vmatprep.mubr.msk.f32.mxu1 %vm3571_vm1, %v4584_v1 }
 0x509   : > { %3299 = vmatpush3.msra.mxu0 %v3035_v46  ;;  %3318 = vmatpush3.msra.mxu1 %v3044_v61  ;;  %v3046_v46 = vld [vmem:[%s4560_s8 + $0x40] sm:$0xff] }
 0x50a   : > { %3300 = vmatprep.subr.mxu0 %v4584_v1  ;;  %3319 = vmatprep.subr.mxu1 %v4584_v1 }
 0x50b   : > { %3301 = vmatpush3.msra.mxu0 %v3034_v7  ;;  %3320 = vmatpush3.msra.mxu1 %v3043_v54 }
 0x50c   : > { %3302 = vmatprep.subr.mxu0 %v4584_v1  ;;  %3321 = vmatprep.subr.mxu1 %v4584_v1 }
 0x50d   : > { %3303 = vmatpush3.msra.mxu0 %v3033_v50  ;;  %3322 = vmatpush3.msra.mxu1 %v3042_v17 }
 0x50e   : > { %3304 = vmatprep.subr.mxu0 %v4584_v1  ;;  %3323 = vmatprep.subr.mxu1 %v4584_v1 }
 0x50f   : > { %3305 = vmatpush3.msra.mxu0 %v3032_v16  ;;  %3324 = vmatpush3.msra.mxu1 %v3041_v38 }
 0x510   : > { %3306 = vmatprep.subr.mxu0 %v4584_v1  ;;  %3325 = vmatprep.subr.mxu1 %v4584_v1 }
 0x511   : > { %3307 = vmatpush3.msra.mxu0 %v3031_v28  ;;  %3326 = vmatpush3.msra.mxu1 %v3040_v32 }
 0x512   : > { %3308 = vmatprep.subr.mxu0 %v4584_v1  ;;  %3327 = vmatprep.subr.mxu1 %v4584_v1 }
 0x513   : > { %3309 = vmatpush3.msra.mxu0 %v3030_v58  ;;  %3328 = vmatpush3.msra.mxu1 %v3039_v10 }
 0x514   : > { %3310 = vmatprep.subr.mxu0 %v4584_v1  ;;  %3329 = vmatprep.subr.mxu1 %v4584_v1 }
 0x515   : > { %3311 = vmatpush3.msra.mxu0 %v3029_v15  ;;  %3330 = vmatpush3.msra.mxu1 %v3038_v9 }
 0x516   : > { %3312 = vmatprep.subr.mxu0 %v4584_v1  ;;  %3331 = vmatprep.subr.mxu1 %v4584_v1 }
 0x517   : > { %3313 = vmatpush3.msra.mxu0 %v3028_v42  ;;  %3332 = vmatpush3.msra.mxu1 %v3037_v49 }
 0x518   : > { %3336 = vmatprep.subr.mxu0 %v4584_v1  ;;  %3355 = vmatprep.subr.mxu1 %v4584_v1 }
 0x5c7   : > { %v1794_v34 = vpop.f32.mrf.mxu0  ;;  %v4247_v20 = vpop.f32.mrf.mxu1 }
 0x5c8   : > { %v1880_v63 = vrot.slane %v1794_v34, 5  ;;  %v1888_v35 = vrot.slane %v1794_v34, 6  ;;  %v1896_v59 = vrot.slane %v1794_v34, 7  ;;  %v1879_v11 = vmul.f32 %v1878_v25, %v1794_v34 }
 0x5c9   : > { %v3286_v27 = vpop.f32.mrf.mxu0  ;;  %v3297_v33 = vpop.f32.mrf.mxu1 }
 0x5ca   : > { %v1881_v53 = vsel %vm669_vm2, %v1880_v63, 0.0  ;;  %v1889_v41 = vsel %vm680_vm3, %v1888_v35, 0.0  ;;  %v1897_v47 = vsel %vm691_vm4, %v1896_v59, 0.0  ;;  %v3068_v35 = vld [vmem:[%s4565_s13 + $0x68] sm:$0xff]  ;;  %v3067_v27 = vld [vmem:[%s4565_s13 + $0x60] sm:$0xff] }
 0x5cb   : > { %v1886_v60 = vmul.f32 %v1885_v51, %v1881_v53  ;;  %v1894_v30 = vmul.f32 %v1893_v14, %v1889_v41  ;;  %v1902_v6 = vmul.f32 %v1901_v2, %v1897_v47  ;;  %v3057_v14 = vld [vmem:[%s4562_s10 + $0x1] ss:$0 sm:$0xff]  ;;  %v3066_v53 = vld [vmem:[%s4565_s13 + $0x58] sm:$0xff] }
 0x5cd   : > { %v1887_v3 = vadd.f32 %v1886_v60, %v1879_v11  ;;  %v3065_v60 = vld [vmem:[%s4565_s13 + $0x50] sm:$0xff] }
 0x5cf   : > { %v1895_v57 = vadd.f32 %v1894_v30, %v1887_v3  ;;  %v3064_v3 = vld [vmem:[%s4565_s13 + $0x48] sm:$0xff] }
 0x5d1   : > { %v1903_v56 = vadd.f32 %v1902_v6, %v1895_v57  ;;  %v3063_v57 = vld [vmem:[%s4565_s13 + $0x40] sm:$0xff] }
 0x5d3   : > { %v1912_v5 = vadd.f32 %v3027_v45, %v1903_v56 }
 0x5d5   : > { %v1913_v62 = vmul.f32 0.5, %v1912_v5 }
 0x5d7   : > { %3465 = vtanh.f32 %v1913_v62 }
 0x5e4   : > { %v3466_v8 = vpop.eup %3465 }
 0x5e5   : > { %v1915_v22 = vmul.f32 0.5, %v3466_v8 }
 0x5e7   : > { %v1916_v31 = vadd.f32 0.5, %v1915_v22 }
 0x5e9   : > { %v4260_v21 = vmul.f32 %v1916_v31, %v1912_v5 }
 0x5eb   : > { %3315 = vmatmul.mubr.msk.f32.vlgmr.msra.gmra.mxu0 %vm722_vm5, %v4260_v21  ;;  %3334 = vmatmul.mubr.msk.f32.vlgmr.msra.gmra.mxu1 %vm722_vm5, %v4260_v21 }
 0x5ec   : > { %3337 = vmatpush3.msra.mxu0 %v3053_v36  ;;  %3352 = vmatprep.mubr.msk.f32.mxu0 %vm3571_vm1, %v4584_v1 }
 0x5ed   : > { %3338 = vmatprep.subr.mxu0 %v4584_v1  ;;  %3356 = vmatpush3.msra.mxu1 %v3055_v12 }
 0x5ee   : > { %3339 = vmatpush3.msra.mxu0 %v3052_v52  ;;  %3357 = vmatprep.mubr.msk.f32.mxu1 %vm3571_vm1, %v4584_v1 }
 0x5ef   : > { %3340 = vmatprep.subr.mxu0 %v4584_v1  ;;  %3360 = vmatprep.subr.mxu1 %v4584_v1 }
 0x5f0   : > { %3341 = vmatpush3.msra.mxu0 %v3051_v13 }
 0x5f1   : > { %3342 = vmatprep.subr.mxu0 %v4584_v1 }
 0x5f2   : > { %3343 = vmatpush3.msra.mxu0 %v3050_v48 }
 0x5f3   : > { %3344 = vmatprep.subr.mxu0 %v4584_v1 }
 0x5f4   : > { %3345 = vmatpush3.msra.mxu0 %v3049_v43 }
 0x5f5   : > { %3346 = vmatprep.subr.mxu0 %v4584_v1 }
 0x5f6   : > { %3347 = vmatpush3.msra.mxu0 %v3048_v0 }
 0x5f7   : > { %3348 = vmatprep.subr.mxu0 %v4584_v1 }
 0x5f8   : > { %3349 = vmatpush3.msra.mxu0 %v3047_v4 }
 0x5f9   : > { %3350 = vmatprep.subr.mxu0 %v4584_v1 }
 0x5fa   : > { %3351 = vmatpush3.msra.mxu0 %v3046_v46 }
 0x5fb   : > { %3353 = vmatmul.mubr.msk.f32.vlgmr.msra.gmra.mxu0 %vm722_vm5, %v4260_v21 }
 0x6ab   : > { %v1996_v61 = vpop.f32.mrf.mxu0  ;;  %v2075_v7 = vpop.f32.mrf.mxu1 }
 0x6ac   : > { %3358 = vmatmul.mubr.msk.f32.vlgmr.msra.gmra.mxu1 %vm960_vm6, %v1996_v61  ;;  %v2495_v54 = vrot.slane %v2075_v7, %v3910_v19  ;;  %v2451_v50 = vrot.slane %v2075_v7, %v3831_v39  ;;  %v2528_v38 = vrot.slane %v2075_v7, %v3926_v29  ;;  %v2462_v28 = vrot.slane %v2075_v7, %v3834_v40 }
 0x6ad   : > { %v3316_v17 = vpop.f32.mrf.mxu0  ;;  %v3335_v16 = vpop.f32.mrf.mxu1  ;;  %3376 = vmatprep.mubr.msk.f32.mxu1 %vm3571_vm1, %v4584_v1  ;;  %v2473_v10 = vrot.slane %v2075_v7, %v3841_v44  ;;  %v2484_v49 = vrot.slane %v2075_v7, %v3825_v37 }
 0x6ae   : > { %2497 = vbcast.lane.b32.xlu0 %v2495_v54, 256  ;;  %2453 = vbcast.lane.b32.xlu1 %v2451_v50, 256  ;;  %v4390_v16 = vld [vmem:[%s4563_s11 + $0x10] sm:$0xff] }
 0x6b2   : > { %2530 = vbcast.lane.b32.xlu0 %v2528_v38, 256  ;;  %2457 = vbcast.lane.b32.xlu1 %v2451_v50, 264 }
 0x6b6   : > { %2464 = vbcast.lane.b32.xlu1 %v2462_v28, 256 }
 0x6ba   : > { %2468 = vbcast.lane.b32.xlu1 %v2462_v28, 264 }
 0x6bb   : > { %v2154_v32 = vpop.f32.mrf.mxu0 }
 0x6bc   : > { %v2595_v58 = vrot.slane %v2154_v32, %v3831_v39  ;;  %v2606_v9 = vrot.slane %v2154_v32, %v3834_v40  ;;  %v2617_v42 = vrot.slane %v2154_v32, %v3841_v44  ;;  %v2628_v18 = vrot.slane %v2154_v32, %v3825_v37 }
 0x6bd   : > { %v3354_v15 = vpop.f32.mrf.mxu0  ;;  %v2639_v34 = vrot.slane %v2154_v32, %v3910_v19  ;;  %v2650_v25 = vrot.slane %v2154_v32, %v3917_v24  ;;  %v2506_v40 = vrot.slane %v2075_v7, %v3917_v24  ;;  %v2661_v44 = vrot.slane %v2154_v32, %v3921_v26 }
 0x6be   : > { %2597 = vbcast.lane.b32.xlu0 %v2595_v58, 256  ;;  %2475 = vbcast.lane.b32.xlu1 %v2473_v10, 256  ;;  %v2672_v51 = vrot.slane %v2154_v32, %v3926_v29  ;;  %v2517_v37 = vrot.slane %v2075_v7, %v3921_v26  ;;  %v3070_v26 = vld [vmem:[%s4565_s13 + $0x78] sm:$0xff]  ;;  %v3069_v29 = vld [vmem:[%s4565_s13 + $0x70] sm:$0xff] }
 0x6bf   : > { %3361 = vmatpush3.msra.mxu1 %v3070_v26 }
 0x6c0   : > { %3362 = vmatprep.subr.mxu1 %v4584_v1 }
 0x6c1   : > { %3363 = vmatpush3.msra.mxu1 %v3069_v29 }
 0x6c2   : > { %2608 = vbcast.lane.b32.xlu0 %v2606_v9, 256  ;;  %2479 = vbcast.lane.b32.xlu1 %v2473_v10, 264 }
 0x6c3   : > { %3364 = vmatprep.subr.mxu1 %v4584_v1 }
 0x6c4   : > { %3365 = vmatpush3.msra.mxu1 %v3068_v35 }
 0x6c5   : > { %3366 = vmatprep.subr.mxu1 %v4584_v1 }
 0x6c6   : > { %2619 = vbcast.lane.b32.xlu0 %v2617_v42, 256  ;;  %2486 = vbcast.lane.b32.xlu1 %v2484_v49, 256 }
 0x6c7   : > { %3367 = vmatpush3.msra.mxu1 %v3067_v27 }
 0x6c8   : > { %3368 = vmatprep.subr.mxu1 %v4584_v1 }
 0x6c9   : > { %3369 = vmatpush3.msra.mxu1 %v3066_v53 }
 0x6ca   : > { %2630 = vbcast.lane.b32.xlu0 %v2628_v18, 256  ;;  %2490 = vbcast.lane.b32.xlu1 %v2484_v49, 264 }
 0x6cb   : > { %3370 = vmatprep.subr.mxu1 %v4584_v1 }
 0x6cc   : > { %3371 = vmatpush3.msra.mxu1 %v3065_v60 }
 0x6cd   : > { %3372 = vmatprep.subr.mxu1 %v4584_v1 }
 0x6ce   : > { %2641 = vbcast.lane.b32.xlu0 %v2639_v34, 256  ;;  %2501 = vbcast.lane.b32.xlu1 %v2495_v54, 264 }
 0x6cf   : > { %3373 = vmatpush3.msra.mxu1 %v3064_v3 }
 0x6d0   : > { %3374 = vmatprep.subr.mxu1 %v4584_v1 }
 0x6d1   : > { %3375 = vmatpush3.msra.mxu1 %v3063_v57 }
 0x6d2   : > { %2652 = vbcast.lane.b32.xlu0 %v2650_v25, 256  ;;  %2508 = vbcast.lane.b32.xlu1 %v2506_v40, 256 }
 0x6d6   : > { %2663 = vbcast.lane.b32.xlu0 %v2661_v44, 256  ;;  %2512 = vbcast.lane.b32.xlu1 %v2506_v40, 264 }
 0x6da   : > { %2674 = vbcast.lane.b32.xlu0 %v2672_v51, 256  ;;  %2519 = vbcast.lane.b32.xlu1 %v2517_v37, 256 }
 0x6de   : > { %2523 = vbcast.lane.b32.xlu1 %v2517_v37, 264 }
 0x6e2   : > { %2534 = vbcast.lane.b32.xlu1 %v2528_v38, 264  ;;  %v4395_v38 = vld [vmem:[%s4563_s11 + $0x18] sm:$0xff] }
 0x6e6   : > { %2601 = vbcast.lane.b32.xlu1 %v2595_v58, 264 }
 0x6ea   : > { %2612 = vbcast.lane.b32.xlu1 %v2606_v9, 264 }
 0x6ee   : > { %2623 = vbcast.lane.b32.xlu1 %v2617_v42, 264 }
 0x6f2   : > { %2634 = vbcast.lane.b32.xlu1 %v2628_v18, 264 }
 0x6f6   : > { %2645 = vbcast.lane.b32.xlu1 %v2639_v34, 264 }
 0x6fa   : > { %2656 = vbcast.lane.b32.xlu1 %v2650_v25, 264 }
 0x6fe   : > { %2667 = vbcast.lane.b32.xlu1 %v2661_v44, 264 }
 0x702   : > { %2678 = vbcast.lane.b32.xlu1 %v2672_v51, 264 }
 0x720   : > { %v4326_v19 = vpop.permute.xlu1 %2453  ;;  %v4401_v9 = vpop.permute.xlu0 %2497 }
 0x724   : > { %v4328_v24 = vpop.permute.xlu1 %2457  ;;  %v4413_v27 = vpop.permute.xlu0 %2530 }
 0x728   : > { %v4330_v63 = vpop.permute.xlu1 %2464 }
 0x72c   : > { %v4342_v59 = vpop.permute.xlu1 %2468 }
 0x730   : > { %v4359_v2 = vpop.permute.xlu1 %2475 }
 0x734   : > { %v4370_v45 = vpop.permute.xlu1 %2479 }
 0x738   : > { %v4372_v56 = vpop.permute.xlu1 %2486 }
 0x73c   : > { %v4374_v5 = vpop.permute.xlu1 %2490 }
 0x740   : > { %v4376_v22 = vpop.permute.xlu1 %2501 }
 0x744   : > { %v4378_v36 = vpop.permute.xlu1 %2508 }
 0x748   : > { %v4380_v1 = vpop.permute.xlu1 %2512 }
 0x74c   : > { %v4383_v7 = vpop.permute.xlu1 %2519 }
 0x750   : > { %v4399_v15 = vpop.permute.xlu1 %2523 }
 0x754   : > { %v4410_v29 = vpop.permute.xlu1 %2534 }
 0x76c   : > { %v2237_v33 = vpop.f32.mrf.mxu1 }
 0x76d   : > { %v2238_v41 = vadd.f32 %v3057_v14, %v2237_v33 }
 0x76e   : > { %v3359_v11 = vpop.f32.mrf.mxu1 }
 0x76f   : > { %v2242_v47 = vand.u32 2147483647, %v2238_v41  ;;  %v2241_v0 = vmax.f32 %v2238_v41, 0.0 }
 0x771   : > { %v2243_v30 = vsub.f32 0.0, %v2242_v47 }
 0x773   : > { %v2244_v6 = vmul.f32 1.442695, %v2243_v30  ;;  %v4420_v30 = vpop.permute.xlu0 %2597 }
 0x775   : > { %3467 = vpow2.f32 %v2244_v6 }
 0x782   : > { %v3468_v62 = vpop.eup %3467 }
 0x783   : > { %v2246_v8 = vadd.f32 1.0, %v3468_v62  ;;  %v2249_v31 = vmul.f32 -0.5, %v3468_v62  ;;  %v2252_v52 = vand.u32 2147483647, %v3468_v62 }
 0x785   : > { %3469 = vlog2.f32 %v2246_v8  ;;  %v2250_v12 = vadd.f32 1.0, %v2249_v31  ;;  %vm2253_vm15 = vcmp.lt.f32.partialorder %v2252_v52, 0.0004427343  ;;  %v4424_v8 = vpop.permute.xlu1 %2601 }
 0x787   : > { %v2251_v43 = vmul.f32 %v3468_v62, %v2250_v12 }
 0x792   : > { %v3470_v13 = vpop.eup %3469 }
 0x793   : > { %v2248_v48 = vmul.f32 0.6931472, %v3470_v13 }
 0x795   : > { %v2254_v4 = vsel %vm2253_vm15, %v2251_v43, %v2248_v48 }
 0x796   : > { %v2255_v46 = vadd.f32 %v2254_v4, %v2241_v0 }
 0x798   : > { %v2267_v61 = vrot.slane %v2255_v46, %v3994_v23  ;;  %v2260_v28 = vcombine.high %v2255_v46, %v2255_v46  ;;  %v2397_v26 = vmul.f32 %v2255_v46, %v4260_v21 }
 0x79a   : > { %v2275_v54 = vcombine.high %v2267_v61, %v2267_v61  ;;  %v2283_v50 = vrot.slane %v2267_v61, %v3994_v23  ;;  %v2274_v18 = vrot.slane %v2260_v28, %v3994_v23  ;;  %v2406_v47 = vrot.slane %v2397_v26, %v3994_v23  ;;  %v2609_v28 = vpop.permute.xlu0 %2608 }
 0x79b   : > { %v2399_v0 = vcombine.high %v2397_v26, %v2397_v26 }
 0x79c   : > { %v2297_v17 = vrot.slane %v2275_v54, %v3994_v23  ;;  %v2312_v32 = vrot.slane %v2283_v50, %v3831_v39  ;;  %v2305_v58 = vcombine.high %v2283_v50, %v2283_v50  ;;  %v2276_v35 = vcombine.high %v2274_v18, %v2274_v18 }
 0x79d   : > { %v2290_v14 = vrot.slane %v2274_v18, %v3994_v23  ;;  %v2414_v13 = vcombine.high %v2406_v47, %v2406_v47  ;;  %v2422_v48 = vrot.slane %v2406_v47, %v3994_v23 }
 0x79e   : > { %v2316_v10 = vrot.slane %v2297_v17, %v3831_v39  ;;  %v2349_v42 = vmul.f32 %v4390_v16, %v2312_v32  ;;  %v2350_v49 = vmul.f32 %v4395_v38, %v2312_v32  ;;  %v2307_v34 = vcombine.high %v2297_v17, %v2297_v17 }
 0x79f   : > { %v2320_v25 = vrot.slane %v2305_v58, %v3831_v39  ;;  %v2304_v3 = vrot.slane %v2276_v35, %v3994_v23  ;;  %v2328_v57 = vrot.slane %v2290_v14, %v3831_v39  ;;  %v2306_v31 = vcombine.high %v2290_v14, %v2290_v14 }
 0x7a0   : > { %v2351_v40 = vmul.f32 %v4390_v16, %v2316_v10  ;;  %v2352_v44 = vmul.f32 %v4395_v38, %v2316_v10  ;;  %v2365_v51 = vmul.f32 1.442695, %v2349_v42  ;;  %v2367_v37 = vmul.f32 1.442695, %v2350_v49  ;;  %v2613_v42 = vpop.permute.xlu1 %2612 }
 0x7a1   : > { %v2324_v33 = vrot.slane %v2307_v34, %v3831_v39  ;;  %v2353_v53 = vmul.f32 %v4390_v16, %v2320_v25  ;;  %v2354_v11 = vmul.f32 %v4395_v38, %v2320_v25  ;;  %v2308_v43 = vcombine.high %v2304_v3, %v2304_v3 }
 0x7a2   : > { %3471 = vpow2.f32 %v2365_v51  ;;  %v2369_v41 = vmul.f32 1.442695, %v2351_v40  ;;  %v2371_v60 = vmul.f32 1.442695, %v2352_v44  ;;  %v2332_v4 = vrot.slane %v2304_v3, %v3831_v39  ;;  %v2620_v3 = vpop.permute.xlu0 %2619 }
 0x7a3   : > { %3473 = vpow2.f32 %v2367_v37  ;;  %v2355_v6 = vmul.f32 %v4390_v16, %v2324_v33  ;;  %v2373_v62 = vmul.f32 1.442695, %v2353_v53  ;;  %v2356_v12 = vmul.f32 %v4395_v38, %v2324_v33 }
 0x7a4   : > { %3475 = vpow2.f32 %v2369_v41  ;;  %v2375_v52 = vmul.f32 1.442695, %v2354_v11  ;;  %v2357_v46 = vmul.f32 %v4390_v16, %v2328_v57  ;;  %v2336_v54 = vrot.slane %v2306_v31, %v3831_v39 }
 0x7a5   : > { %3477 = vpow2.f32 %v2371_v60  ;;  %v2377_v61 = vmul.f32 1.442695, %v2355_v6  ;;  %v2358_v50 = vmul.f32 %v4395_v38, %v2328_v57  ;;  %v2379_v17 = vmul.f32 1.442695, %v2356_v12  ;;  %v2624_v12 = vpop.permute.xlu1 %2623 }
 0x7a6   : > { %3479 = vpow2.f32 %v2373_v62  ;;  %v2436_v32 = vrot.slane %v2414_v13, %v3994_v23  ;;  %v2539_v58 = vrot.slane %v2422_v48, %v3831_v39  ;;  %v2817_v10 = vmul.f32 0.5, %v4247_v20 }
 0x7a7   : > { %3481 = vpow2.f32 %v2375_v52  ;;  %v2340_v49 = vrot.slane %v2308_v43, %v3831_v39  ;;  %v2359_v18 = vmul.f32 %v4390_v16, %v2332_v4  ;;  %v2381_v34 = vmul.f32 1.442695, %v2357_v46 }
 0x7a8   : > { %3483 = vpow2.f32 %v2377_v61  ;;  %v2413_v25 = vrot.slane %v2399_v0, %v3994_v23  ;;  %v2360_v44 = vmul.f32 %v4395_v38, %v2332_v4  ;;  %v2361_v51 = vmul.f32 %v4390_v16, %v2336_v54 }
 0x7a9   : > { %3485 = vpow2.f32 %v2379_v17  ;;  %v2383_v37 = vmul.f32 1.442695, %v2358_v50  ;;  %v2444_v35 = vcombine.high %v2422_v48, %v2422_v48  ;;  %v2543_v14 = vrot.slane %v2436_v32, %v3831_v39 }
 0x7aa   : > { %v2576_v33 = vmul.f32 %v2539_v58, %v4326_v19  ;;  %v2362_v41 = vmul.f32 %v4395_v38, %v2336_v54  ;;  %v2363_v11 = vmul.f32 %v4390_v16, %v2340_v49  ;;  %v2577_v60 = vmul.f32 %v2539_v58, %v4328_v24 }
 0x7ab   : > { %3487 = vpow2.f32 %v2381_v34  ;;  %v2385_v57 = vmul.f32 1.442695, %v2359_v18  ;;  %v2415_v62 = vcombine.high %v2413_v25, %v2413_v25  ;;  %v2387_v13 = vmul.f32 1.442695, %v2360_v44 }
 0x7ac   : > { %3489 = vpow2.f32 %v2383_v37  ;;  %v2446_v48 = vcombine.high %v2436_v32, %v2436_v32  ;;  %v2547_v43 = vrot.slane %v2444_v35, %v3831_v39  ;;  %v2578_v0 = vmul.f32 %v2543_v14, %v4330_v63 }
 0x7ad   : > { %v4448_v24 = vrot.slane %v2413_v25, %v3994_v23  ;;  %3491 = vtanh.f32 %v2817_v10  ;;  %v2389_v4 = vmul.f32 1.442695, %v2361_v51  ;;  %v2579_v46 = vmul.f32 %v2543_v14, %v4342_v59  ;;  %v2631_v25 = vpop.permute.xlu0 %2630  ;;  %v2635_v51 = vpop.permute.xlu1 %2634 }
 0x7ae   : > { %3493 = vpow2.f32 %v2385_v57  ;;  %v2393_v54 = vmul.f32 1.442695, %v2363_v11  ;;  %v4452_v17 = vrot.slane %v2415_v62, %v3994_v23  ;;  %v2551_v58 = vrot.slane %v2446_v48, %v3831_v39 }
 0x7af   : > { %v3472_v40 = vpop.eup %3471  ;;  %3495 = vpow2.f32 %v2387_v13  ;;  %v2391_v18 = vmul.f32 1.442695, %v2362_v41  ;;  %v2580_v10 = vmul.f32 %v2547_v43, %v4359_v2  ;;  %v2555_v59 = vrot.slane %v4448_v24, %v3831_v39 }
 0x7b0   : > { %v3474_v26 = vpop.eup %3473  ;;  %v2680_v53 = vmul.f32 0.0, %v3472_v40  ;;  %v2364_v44 = vmul.f32 %v4395_v38, %v2340_v49  ;;  %v2581_v23 = vmul.f32 %v2547_v43, %v4370_v45  ;;  %3497 = vpow2.f32 %v2389_v4 }
 0x7b1   : > { %v2681_v47 = vmul.f32 0.0, %v3474_v26  ;;  %v3476_v31 = vpop.eup %3475  ;;  %v2582_v11 = vmul.f32 %v2551_v58, %v4372_v56  ;;  %3499 = vpow2.f32 %v2391_v18  ;;  %v2642_v62 = vpop.permute.xlu0 %2641  ;;  %v2445_v56 = vcombine.high %v4448_v24, %v4448_v24 }
 0x7b2   : > { %v2682_v6 = vadd.f32 %v2680_v53, %v2576_v33  ;;  %v3478_v19 = vpop.eup %3477  ;;  %v2559_v33 = vrot.slane %v4452_v17, %v3831_v39  ;;  %v2395_v49 = vmul.f32 1.442695, %v2364_v44  ;;  %3501 = vpow2.f32 %v2393_v54  ;;  %v2646_v13 = vpop.permute.xlu1 %2645 }
 0x7b3   : > { %v2683_v52 = vadd.f32 %v2681_v47, %v2577_v60  ;;  %v3480_v32 = vpop.eup %3479  ;;  %v2584_v43 = vmul.f32 %v2555_v59, %v4401_v9  ;;  %v2585_v4 = vmul.f32 %v2555_v59, %v4376_v22 }
 0x7b4   : > { %v2695_v16 = vmul.f32 %v3476_v31, %v2682_v6  ;;  %v3482_v34 = vpop.eup %3481  ;;  %v2684_v14 = vmul.f32 %v2682_v6, %v4420_v30  ;;  %3503 = vpow2.f32 %v2395_v49  ;;  %v2587_v59 = vmul.f32 %v2559_v33, %v4380_v1 }
 0x7b5   : > { %v2696_v61 = vmul.f32 %v3478_v19, %v2683_v52  ;;  %v3484_v2 = vpop.eup %3483  ;;  %v2685_v41 = vmul.f32 %v2683_v52, %v4424_v8  ;;  %v2653_v22 = vpop.permute.xlu0 %2652 }
 0x7b6   : > { %v2697_v50 = vadd.f32 %v2695_v16, %v2578_v0  ;;  %v3486_v38 = vpop.eup %3485  ;;  %v2686_v8 = vsel %vm722_vm5, %v2684_v14, 0.0 }
 0x7b7   : > { %v2698_v63 = vadd.f32 %v2696_v61, %v2579_v46 }
 0x7b8   : > { %v2710_v40 = vmul.f32 %v3480_v32, %v2697_v50  ;;  %v2699_v37 = vmul.f32 %v2697_v50, %v2609_v28  ;;  %v2583_v28 = vmul.f32 %v2551_v58, %v4374_v5  ;;  %v3488_v52 = vpop.eup %3487  ;;  %v2687_v5 = vsel %vm722_vm5, %v2685_v41, 0.0 }
 0x7b9   : > { %v2700_v26 = vmul.f32 %v2698_v63, %v2613_v42  ;;  %v2711_v35 = vmul.f32 %v3482_v34, %v2698_v63  ;;  %v3490_v19 = vpop.eup %3489  ;;  %v2688_v50 = vadd.f32 %v2687_v5, %v2686_v8  ;;  %v2563_v63 = vrot.slane %v2445_v56, %v3831_v39  ;;  %v2664_v8 = vpop.permute.xlu0 %2663 }
 0x7ba   : > { %v2712_v53 = vadd.f32 %v2710_v40, %v2580_v10  ;;  %v2701_v6 = vsel %vm722_vm5, %v2699_v37, 0.0  ;;  %v4476_v54 = vpop.eup %3491  ;;  %v2586_v34 = vmul.f32 %v2559_v33, %v4378_v36  ;;  %v2447_v37 = vcombine.high %v4452_v17, %v4452_v17 }
 0x7bb   : > { %v2713_v60 = vadd.f32 %v2711_v35, %v2581_v23  ;;  %v2702_v47 = vsel %vm722_vm5, %v2700_v26, 0.0  ;;  %v3494_v18 = vpop.eup %3493  ;;  %v2657_v35 = vpop.permute.xlu1 %2656  ;;  %v2689_v36 = vrot.slane %v2688_v50, 4  ;;  %v2589_v49 = vmul.f32 %v2563_v63, %v4399_v15 }
 0x7bc   : > { %v2725_v45 = vmul.f32 %v3484_v2, %v2712_v53  ;;  %v2714_v42 = vmul.f32 %v2712_v53, %v2620_v3  ;;  %v2703_v16 = vadd.f32 %v2702_v47, %v2701_v6  ;;  %v3496_v44 = vpop.eup %3495  ;;  %v2567_v47 = vrot.slane %v2447_v37, %v3831_v39 }
 0x7bd   : > { %v2715_v30 = vmul.f32 %v2713_v60, %v2624_v12  ;;  %v2726_v57 = vmul.f32 %v3486_v38, %v2713_v60  ;;  %v3498_v60 = vpop.eup %3497 }
 0x7be   : > { %v2727_v31 = vadd.f32 %v2725_v45, %v2582_v11  ;;  %v2716_v12 = vsel %vm722_vm5, %v2714_v42, 0.0  ;;  %v2588_v11 = vmul.f32 %v2563_v63, %v4383_v7  ;;  %v3500_v45 = vpop.eup %3499  ;;  %v2690_v7 = vadd.f32 %v2689_v36, %v2688_v50 }
 0x7bf   : > { %v2717_v3 = vsel %vm722_vm5, %v2715_v30, 0.0  ;;  %v2728_v48 = vadd.f32 %v2726_v57, %v2583_v28  ;;  %v2590_v39 = vmul.f32 %v2567_v47, %v4413_v27 }
 0x7c0   : > { %v2740_v0 = vmul.f32 %v3488_v52, %v2727_v31  ;;  %v2729_v24 = vmul.f32 %v2727_v31, %v2631_v25  ;;  %v2718_v58 = vadd.f32 %v2717_v3, %v2716_v12  ;;  %v2691_v50 = vrot.slane %v2690_v7, 2 }
 0x7c1   : > { %v2730_v46 = vmul.f32 %v2728_v48, %v2635_v51  ;;  %v2741_v61 = vmul.f32 %v3490_v19, %v2728_v48  ;;  %v2704_v51 = vrot.slane %v2703_v16, 4  ;;  %v2668_v19 = vpop.permute.xlu1 %2667 }
 0x7c2   : > { %v2742_v32 = vadd.f32 %v2740_v0, %v2584_v43  ;;  %v2731_v40 = vsel %vm722_vm5, %v2729_v24, 0.0  ;;  %v2719_v41 = vrot.slane %v2718_v58, 4  ;;  %v2591_v0 = vmul.f32 %v2567_v47, %v4410_v29 }
 0x7c3   : > { %v2732_v9 = vsel %vm722_vm5, %v2730_v46, 0.0  ;;  %v2743_v10 = vadd.f32 %v2741_v61, %v2585_v4  ;;  %v2705_v30 = vadd.f32 %v2704_v51, %v2703_v16 }
 0x7c4   : > { %v2755_v25 = vmul.f32 %v3494_v18, %v2742_v32  ;;  %v2733_v14 = vadd.f32 %v2732_v9, %v2731_v40  ;;  %v2744_v53 = vmul.f32 %v2742_v32, %v2642_v62  ;;  %v2720_v31 = vadd.f32 %v2719_v41, %v2718_v58  ;;  %v2675_v40 = vpop.permute.xlu0 %2674 }
 0x7c5   : > { %v2745_v23 = vmul.f32 %v2743_v10, %v2646_v13  ;;  %v2756_v26 = vmul.f32 %v3496_v44, %v2743_v10  ;;  %v3502_v13 = vpop.eup %3501  ;;  %v2706_v4 = vrot.slane %v2705_v30, 2 }
 0x7c6   : > { %v2757_v2 = vadd.f32 %v2755_v25, %v2586_v34  ;;  %v2734_v1 = vrot.slane %v2733_v14, 4  ;;  %v2746_v33 = vsel %vm722_vm5, %v2744_v53, 0.0  ;;  %v3504_v16 = vpop.eup %3503  ;;  %v2721_v32 = vrot.slane %v2720_v31, 2  ;;  %v2679_v25 = vpop.permute.xlu1 %2678 }
 0x7c7   : > { %v2747_v38 = vsel %vm722_vm5, %v2745_v23, 0.0  ;;  %v2758_v28 = vadd.f32 %v2756_v26, %v2587_v59  ;;  %v2707_v59 = vadd.f32 %v2706_v4, %v2705_v30 }
 0x7c8   : > { %v2748_v42 = vadd.f32 %v2747_v38, %v2746_v33  ;;  %v2759_v17 = vmul.f32 %v2757_v2, %v2653_v22  ;;  %v2770_v6 = vmul.f32 %v3498_v60, %v2757_v2  ;;  %v2735_v5 = vadd.f32 %v2734_v1, %v2733_v14 }
 0x7c9   : > { %v2760_v57 = vmul.f32 %v2758_v28, %v2657_v35  ;;  %v2771_v62 = vmul.f32 %v3500_v45, %v2758_v28  ;;  %v2722_v37 = vadd.f32 %v2721_v32, %v2720_v31  ;;  %v2692_v14 = vadd.f32 %v2691_v50, %v2690_v7 }
 0x7ca   : > { %v2749_v56 = vrot.slane %v2748_v42, 4  ;;  %v2761_v52 = vsel %vm722_vm5, %v2759_v17, 0.0  ;;  %v2772_v48 = vadd.f32 %v2770_v6, %v2588_v11  ;;  %v2736_v18 = vrot.slane %v2735_v5, 2 }
 0x7cb   : > { %v2762_v3 = vsel %vm722_vm5, %v2760_v57, 0.0  ;;  %v2773_v12 = vadd.f32 %v2771_v62, %v2589_v49  ;;  %v2708_v60 = vrot.slane %v2707_v59, 1  ;;  %v2723_v1 = vrot.slane %v2722_v37, 1 }
 0x7cc   : > { %v2750_v15 = vadd.f32 %v2749_v56, %v2748_v42  ;;  %v2763_v43 = vadd.f32 %v2762_v3, %v2761_v52  ;;  %v2774_v46 = vmul.f32 %v2772_v48, %v2664_v8  ;;  %v2785_v24 = vmul.f32 %v3502_v13, %v2772_v48 }
 0x7cd   : > { %v2775_v61 = vmul.f32 %v2773_v12, %v2668_v19  ;;  %v2786_v63 = vmul.f32 %v3504_v16, %v2773_v12  ;;  %v2737_v53 = vadd.f32 %v2736_v18, %v2735_v5  ;;  %v2693_v45 = vrot.slane %v2692_v14, 1 }
 0x7ce   : > { %v2764_v58 = vrot.slane %v2763_v43, 4  ;;  %v2776_v34 = vsel %vm722_vm5, %v2774_v46, 0.0  ;;  %v2787_v10 = vadd.f32 %v2785_v24, %v2590_v39  ;;  %v2751_v44 = vrot.slane %v2750_v15, 2  ;;  %v3062_v39 = vld [vmem:[%s4564_s12 + $0x1] ss:$0 sm:$0xff] }
 0x7cf   : > { %v2777_v9 = vsel %vm722_vm5, %v2775_v61, 0.0  ;;  %v2788_v29 = vadd.f32 %v2786_v63, %v2591_v0  ;;  %v2738_v42 = vrot.slane %v2737_v53, 1  ;;  %v2709_v30 = vadd.f32 %v2708_v60, %v2707_v59 }
 0x7d0   : > { %v2765_v27 = vadd.f32 %v2764_v58, %v2763_v43  ;;  %v2778_v22 = vadd.f32 %v2777_v9, %v2776_v34  ;;  %v2789_v51 = vmul.f32 %v2787_v10, %v2675_v40  ;;  %v2752_v2 = vadd.f32 %v2751_v44, %v2750_v15 }
 0x7d1   : > { %v2790_v35 = vmul.f32 %v2788_v29, %v2679_v25  ;;  %v2724_v62 = vadd.f32 %v2723_v1, %v2722_v37  ;;  %v2694_v7 = vadd.f32 %v2693_v45, %v2692_v14  ;;  %v2739_v31 = vadd.f32 %v2738_v42, %v2737_v53 }
 0x7d2   : > { %v2766_v23 = vrot.slane %v2765_v27, 2  ;;  %v2779_v26 = vrot.slane %v2778_v22, 4  ;;  %v2791_v36 = vsel %vm722_vm5, %v2789_v51, 0.0  ;;  %v2753_v49 = vrot.slane %v2752_v2, 1 }
 0x7d3   : > { %v2792_v11 = vsel %vm722_vm5, %v2790_v35, 0.0  ;;  %v2819_v52 = vmul.f32 0.5, %v4476_v54  ;;  %v2800_v3 = vsel %vm1592_vm8, %v2694_v7, %v2709_v30  ;;  %v2815_v61 = vmul.f32 %v3062_v39, %v4260_v21 }
 0x7d4   : > { %v2780_v41 = vadd.f32 %v2779_v26, %v2778_v22  ;;  %v2767_v38 = vadd.f32 %v2766_v23, %v2765_v27  ;;  %v2793_v28 = vadd.f32 %v2792_v11, %v2791_v36  ;;  %v2754_v13 = vadd.f32 %v2753_v49, %v2752_v2  ;;  %v3072_v27 = vld [vmem:[%s4566_s14] ss:$0 sm:$0xff] }
 0x7d5   : > { %v2801_v12 = vsel %vm1594_vm9, %v2800_v3, %v2724_v62  ;;  %v2820_v0 = vadd.f32 0.5, %v2819_v52 }
 0x7d6   : > { %v2781_v33 = vrot.slane %v2780_v41, 2  ;;  %v2794_v17 = vrot.slane %v2793_v28, 4  ;;  %v2768_v57 = vrot.slane %v2767_v38, 1  ;;  %v2802_v15 = vsel %vm1596_vm10, %v2801_v12, %v2739_v31 }
 0x7d7   : > { %v2803_v16 = vsel %vm1598_vm11, %v2802_v15, %v2754_v13  ;;  %v2821_v50 = vmul.f32 %v2820_v0, %v4247_v20 }
 0x7d8   : > { %v2782_v47 = vadd.f32 %v2781_v33, %v2780_v41  ;;  %v2795_v6 = vadd.f32 %v2794_v17, %v2793_v28  ;;  %v2769_v5 = vadd.f32 %v2768_v57, %v2767_v38 }
 0x7da   : > { %v2783_v8 = vrot.slane %v2782_v47, 1  ;;  %v2796_v56 = vrot.slane %v2795_v6, 2  ;;  %v2804_v54 = vsel %vm1600_vm12, %v2803_v16, %v2769_v5 }
 0x7dc   : > { %v2797_v48 = vadd.f32 %v2796_v56, %v2795_v6  ;;  %v2784_v19 = vadd.f32 %v2783_v8, %v2782_v47 }
 0x7de   : > { %v2798_v43 = vrot.slane %v2797_v48, 1  ;;  %v2805_v46 = vsel %vm1602_vm13, %v2804_v54, %v2784_v19 }
 0x7e0   : > { %v2799_v4 = vadd.f32 %v2798_v43, %v2797_v48 }
 0x7e2   : > { %v2806_v24 = vsel %vm1604_vm14, %v2805_v46, %v2799_v4 }
 0x7e3   : > { %v2816_v32 = vadd.f32 %v2815_v61, %v2806_v24 }
 0x7e5   : > { %v2822_v58 = vmul.f32 %v2821_v50, %v2816_v32 }
 0x7e7   : > { %3377 = vmatmul.mubr.msk.f32.vlgmr.msra.gmra.mxu1 %vm722_vm5, %v2822_v58 }
 0x8a7   : > { %v2901_v63 = vpop.f32.mrf.mxu1 }
 0x8a8   : > { %v2905_v18 = vadd.f32 %v2901_v63, %v4131_v55 }
 0x8a9   : > { %v3378_v34 = vpop.f32.mrf.mxu1 }
 0x8aa   : > { %v2906_v9 = vmul.f32 %v2905_v18, %v2905_v18 }
 0x8ac   : > { %v2907_v10 = vsel %vm494_vm0, %v2906_v9, 0.0 }
 0x8ad   : > { %2908 = vadd.xlane.f32.xlu0 %v2907_v10 }
 0x936   : > { %v2909_v40 = vpop.xlane.xlu0 %2908 }
 0x937   : > { %v2910_v21 = vmul.f32 0.03125, %v2909_v40 }
 0x939   : > { %v2911_v44 = vadd.f32 1e-05, %v2910_v21 }
 0x93b   : > { %3505 = vrsqrt.f32 %v2911_v44 }
 0x948   : > { %v3506_v20 = vpop.eup %3505 }
 0x949   : > { %v2913_v55 = vmul.f32 %v3506_v20, %v2905_v18 }
 0x94b   : > { %v2921_v22 = vmul.f32 %v3072_v27, %v2913_v55 }
 0x94d   : > { %2922 = vst.msk [vmem:[%s485_s27] sm:$0xff] %vm494_vm0, %v2921_v22 }
 0x94e   : > { %3521 = shalt.err (!%p3518_p3)
}
 0x94f   : > { %s3522_s29 = scalar_lea.hbm %s2935_s25, 128  ;;  %s3526_s27 = scalar_lea.hbm %s4567_s15, 256 }
 0x950   : > { %p3523_p4 = scmp.ne.s32.totalorder %s2935_s25, %s3522_s29  ;;  %p3527_p9 = scmp.lt.s32.totalorder %s2935_s25, %s4567_s15 }
 0x951   : > { %p3528_p10 = scmp.lt.s32.totalorder %s3526_s27, %s3522_s29 }
 0x952   : > { %p3524_p7 = pnand %p3523_p4, %p3692_p5 }
 0x953   : > { %p3529_p11 = por %p3528_p10, %p3527_p9 }
 0x954   : > { %p3525_p8 = pneg %p3524_p7 }
 0x956   : > { %p3530_p12 = pnand %p3529_p11, %p3525_p8 }
 0x958   : > { %3533 = shalt.err (!%p3530_p12)
}
 0x959   : > { %3379 = dma.vmem_to_hbm [thread:$0]  (%p3692_p5), %s2938_s26, 128, %s2935_s25, %s2924_s17  }
 0x95a PF: > { %p3385_p13 = scmp.ge.s32.totalorder %s3568_s21, 2  ;;  %s2949_s23 = sand.u32 1, %s3556_s18  }
 0x95b   : > { %s2950_s20 = scalar_lea.sflag [#allocation3], %s2949_s23 }
 0x95c   : > { %p3382_p0 = pnand %p3385_p13, %p3696_p6 }
 0x95e   : > { %p3383_p1 = pneg %p3382_p0 }
 0x960   : > { %3551 = dma.done.wait (%p3383_p1), %s2950_s20, 128  }
 0x961   : > { %3553 = vsyncadd (%p3383_p1), %s2950_s20, 4294967168  ;;  %s4586_s21 = sld [smem:[#allocation6_spill]]  ;;  %s4589_s18 = smov %s3560_s19 }
 0x962   : > { %s4587_s22 = sld [smem:[#allocation5_spill]] }
 0x963   : > { %s4588_s20 = sld [smem:[#allocation7_spill]] }
 0x967   : > { %p25_p2 = scmp.ge.s32.totalorder %s4586_s21, 4  }
 0x968   : > { %s4590_s19 = smov %s4587_s22 }
 0x969   :  { %27 = sbr.rel (!%p25_p2) target bundleno = 6 (0x6), region = 128 }
 0x96e   :  { %2955 = vsyncpa [#allocation3], 1 }
 0x96f   :  { %2957 = vsyncpa [#allocation3 + $0x1], 1 }

</bundles_post_ra>
